<compile_context>
chip_gen: v7x
topology: tpu7x:2x2x1
jax: 0.10.0
libtpu: 0.0.40
codegen_flags: <defaults>
</compile_context>

<pallas_src>
import jax
import jax.numpy as jnp
import numpy as np
from jax import lax
from jax.experimental import pallas as pl
from jax.experimental.pallas import tpu as pltpu

NEG_SLOPE = 0.01                     # torch.nn.LeakyReLU default slope
HIDDEN_DEPTH = 2                     # module default -> 4 Linear layers per net
_PRECISION = lax.Precision.HIGHEST   # see header note on HIGH / DEFAULT


def _leaky_relu(h):
    return jnp.maximum(h, NEG_SLOPE * h)


def _coupling_kernel(x_ref, w_ref, b_ref, y_ref):
    """Both coupling steps fully in registers; one full-width store at the end.

    Slab layout per step (all layers zero-padded to (P, P) / (P,)):
      L0      : rows[:half] = [s.W0 | t.W0], rows[half:] = 0
      L1..Ld  : block-diag(s.Wk, t.Wk)
      head    : cols[:half-1] = s.Whead, cols[half-1:2*half-1] = t.Whead
    Padded rows/cols are exactly zero, so full-width (B,P)@(P,P) matmuls on
    zero-padded activations are numerically identical to the unpadded nets.
    """
    B, C = x_ref.shape
    half = C // 2
    n_layers = w_ref.shape[0] // 2
    P = w_ref.shape[-1]

    x = x_ref[...].astype(jnp.float32)
    xa = x[:, :half]
    xb = x[:, half:]

    # Hoisted constant (JAX does not CSE broadcasts; build it once).
    lane_pad = jnp.zeros((B, P - half), jnp.float32)

    def fused_mlp(x_half, base):
        # Zero-pad the (B, half) activation to P lanes; every layer is then a
        # uniform full-width (B, P) @ (P, P) MXU pass (no weight row slicing).
        h = jnp.concatenate([x_half, lane_pad], axis=1)
        for k in range(n_layers):
            h = jnp.dot(h, w_ref[base + k],
                        preferred_element_type=jnp.float32,
                        precision=_PRECISION)
            h = h + b_ref[base + k:base + k + 1, :]
            if k < n_layers - 1:
                h = _leaky_relu(h)
        # (B, P): cols[:half-1] = pre-tanh scale, cols[half-1:2*half-1] = t.
        return h

    def coupling_step(x_apply, x_keep, base):
        out = fused_mlp(x_apply, base)
        s = jnp.tanh(out[:, :half - 1])                      # s-net head (use_tanh=True)
        t = out[:, half - 1:2 * half - 1]                    # t-net head
        # Volume-preserving scale: fused [s, -sum(s)] -> single exp, single mul.
        scale = jnp.concatenate(
            [s, -jnp.sum(s, axis=1, keepdims=True)], axis=1)  # (B, half)
        return x_keep * jnp.exp(scale) + t                   # stays in vregs

    xb1 = coupling_step(xa, xb, 0)            # i = 0: nets on xa, transform xb
    xa1 = coupling_step(xb1, xa, n_layers)    # i = 1: halves swapped
    y_ref[...] = jnp.concatenate([xb1, xa1], axis=1).astype(y_ref.dtype)


def pack_params(params, in_channels, hidden_dim):
    """Pack the four nets (s0, t0, s1, t1) into two zero-padded device slabs.

    Call ONCE at parameter-init/update time; the returned jnp arrays stay
    device-resident and are passed to every forward call.
    """
    half = in_channels // 2
    H = hidden_dim
    n_layers = HIDDEN_DEPTH + 2
    P = max(2 * H, 2 * half - 1, half)
    Ws = np.zeros((2 * n_layers, P, P), np.float32)
    Bs = np.zeros((2 * n_layers, P), np.float32)
    for step, (sk, tk) in enumerate((("s0", "t0"), ("s1", "t1"))):
        sp = [np.asarray(a, np.float32) for a in params[sk]]
        tp = [np.asarray(a, np.float32) for a in params[tk]]
        base = step * n_layers
        # layer 0: x(half) -> [s_hidden | t_hidden]; rows >= half stay zero.
        Ws[base, :half, :H] = sp[0]
        Ws[base, :half, H:2 * H] = tp[0]
        Bs[base, :H] = sp[1].reshape(-1)
        Bs[base, H:2 * H] = tp[1].reshape(-1)
        # hidden layers: block-diagonal
        for k in range(1, n_layers - 1):
            Ws[base + k, :H, :H] = sp[2 * k]
            Ws[base + k, H:2 * H, H:2 * H] = tp[2 * k]
            Bs[base + k, :H] = sp[2 * k + 1].reshape(-1)
            Bs[base + k, H:2 * H] = tp[2 * k + 1].reshape(-1)
        # head: s -> cols[:half-1] (pre-tanh scale), t -> cols[half-1:2*half-1]
        kh = n_layers - 1
        Ws[base + kh, :H, :half - 1] = sp[2 * kh]
        Ws[base + kh, H:2 * H, half - 1:2 * half - 1] = tp[2 * kh]
        Bs[base + kh, :half - 1] = sp[2 * kh + 1].reshape(-1)
        Bs[base + kh, half - 1:2 * half - 1] = tp[2 * kh + 1].reshape(-1)
    return jnp.asarray(Ws), jnp.asarray(Bs)


@jax.jit
def gin_double_vector_coupling_forward(x, w_slab, b_slab):
    """x: (B, C, 1, 1) NCHW.  Returns (y of shape (B, C, 1, 1), logdet (B,))."""
    B, C, hs, ws = x.shape
    assert hs == 1 and ws == 1, "expected NCHW input with 1x1 spatial dims"
    assert C % 2 == 0 and C >= 4, "need in_channels even and >= 4 (half - 1 >= 1)"
    half = C // 2
    P = w_slab.shape[-1]
    n_layers = w_slab.shape[0] // 2
    x2d = x.reshape(B, C)

    # Advisory cost hint so XLA's scheduler treats this as the tiny op it is.
    flops = int(2 * (2 * n_layers) * B * P * P)
    trans = int(2 * B * 3 * half)
    bytes_acc = int(4 * (2 * B * C + w_slab.size + b_slab.size))

    y2d = pl.pallas_call(
        _coupling_kernel,
        out_shape=jax.ShapeDtypeStruct((B, C), x2d.dtype),
        in_specs=[
            pl.BlockSpec(memory_space=pltpu.MemorySpace.VMEM),  # x (B, C)
            pl.BlockSpec(memory_space=pltpu.MemorySpace.VMEM),  # weight slab (8, P, P)
            pl.BlockSpec(memory_space=pltpu.MemorySpace.VMEM),  # bias slab (8, P)
        ],
        out_specs=pl.BlockSpec(memory_space=pltpu.MemorySpace.VMEM),
        cost_estimate=pl.CostEstimate(
            flops=flops, transcendentals=trans, bytes_accessed=bytes_acc),
    )(x2d, w_slab, b_slab)

    # logdet is identically zero for this volume-preserving block; no output
    # buffer / writeback DMA burned on it.
    logdet = jnp.zeros((B,), x2d.dtype)
    return y2d[:, :, None, None], logdet


# ----------------------------------------------------------------------------
# Pure-JAX reference (unfused, mirrors the PyTorch forward with reverse=False)
# ----------------------------------------------------------------------------
def _mlp_ref(x, p, use_tanh):
    n = len(p) // 2
    h = x
    for k in range(n):
        h = jnp.dot(h, p[2 * k], preferred_element_type=jnp.float32,
                    precision=_PRECISION) + p[2 * k + 1]
        if k < n - 1:
            h = _leaky_relu(h)
    return jnp.tanh(h) if use_tanh else h


def _get_scale_ref(scale):
    return jnp.concatenate([scale, -jnp.sum(scale, axis=1, keepdims=True)], axis=1)


def reference_forward(x, params):
    B, C = x.shape[0], x.shape[1]
    x2d = x.reshape(B, C)
    half = C // 2
    xa, xb = x2d[:, :half], x2d[:, half:]
    xb1 = xb * jnp.exp(_get_scale_ref(_mlp_ref(xa, params["s0"], True))) \
        + _mlp_ref(xa, params["t0"], False)
    xa1 = xa * jnp.exp(_get_scale_ref(_mlp_ref(xb1, params["s1"], True))) \
        + _mlp_ref(xb1, params["t1"], False)
    y = jnp.concatenate([xb1, xa1], axis=1)
    return y[:, :, None, None], jnp.zeros((B,), x2d.dtype)


def init_net_params(key, dim_in, hidden, dim_out, depth=HIDDEN_DEPTH):
    """Deterministic PyTorch-Linear-style uniform init; biases stored as (1, out)."""
    dims = [dim_in] + [hidden] * (depth + 1) + [dim_out]
    params = []
    for i in range(len(dims) - 1):
        key, k1, k2 = jax.random.split(key, 3)
        bound = 1.0 / np.sqrt(dims[i])
        W = jax.random.uniform(k1, (dims[i], dims[i + 1]), jnp.float32, -bound, bound)
        b = jax.random.uniform(k2, (1, dims[i + 1]), jnp.float32, -bound, bound)
        params += [W, b]
    return params


if __name__ == "__main__":
    B, C, H = 2, 8, 32  # batch, in_channels, hidden_dim
    half = C // 2

    key = jax.random.PRNGKey(0)
    kx, ks0, kt0, ks1, kt1 = jax.random.split(key, 5)

    x = jax.random.normal(kx, (B, C, 1, 1), jnp.float32)

    params = {
        "s0": init_net_params(ks0, half, H, half - 1),  # tanh head
        "t0": init_net_params(kt0, half, H, half),
        "s1": init_net_params(ks1, half, H, half - 1),
        "t1": init_net_params(kt1, half, H, half),
    }

    # Init-time packing (done once; slabs stay resident on device).
    w_slab, b_slab = pack_params(params, C, H)
    w_slab = jax.block_until_ready(w_slab)
    b_slab = jax.block_until_ready(b_slab)

    # Per-step path: just the jitted pallas_call.
    y, logdet = gin_double_vector_coupling_forward(x, w_slab, b_slab)
    y = jax.block_until_ready(y)
    logdet = jax.block_until_ready(logdet)

    y_ref, logdet_ref = reference_forward(x, params)
    np.testing.assert_allclose(np.asarray(y), np.asarray(y_ref), rtol=1e-5, atol=1e-5)
    np.testing.assert_allclose(np.asarray(logdet), np.asarray(logdet_ref), atol=1e-6)
    assert y.shape == (B, C, 1, 1) and logdet.shape == (B,)

    print("KERNEL_OK")
</pallas_src>

<mosaic_0001>
module attributes {stable_mosaic.version = 11 : i64} {
  func.func @_coupling_kernel(%arg0: memref<2x8xf32, #tpu.memory_space<vmem>>, %arg1: memref<8x64x64xf32, #tpu.memory_space<vmem>>, %arg2: memref<8x64xf32, #tpu.memory_space<vmem>>, %arg3: memref<2x8xf32, #tpu.memory_space<vmem>>) attributes {dimension_semantics = [], scalar_prefetch = 0 : i64, scratch_operands = 0 : i64, tpu.core_type = #tpu.core_type<tc>} {
    %c0 = arith.constant 0 : index
    %c0_0 = arith.constant 0 : index
    %0 = vector.load %arg0[%c0, %c0_0] : memref<2x8xf32, #tpu.memory_space<vmem>>, vector<2x8xf32>
    %1 = vector.extract_strided_slice %0 {offsets = [0, 0], sizes = [2, 4], strides = [1, 1]} : vector<2x8xf32> to vector<2x4xf32>
    %2 = vector.extract_strided_slice %0 {offsets = [0, 4], sizes = [2, 4], strides = [1, 1]} : vector<2x8xf32> to vector<2x4xf32>
    %cst = arith.constant 0.000000e+00 : f32
    %3 = vector.broadcast %cst : f32 to vector<2x60xf32>
    %4 = tpu.concatenate %1, %3 in 1 : vector<2x4xf32>, vector<2x60xf32> -> vector<2x64xf32>
    %c0_1 = arith.constant 0 : index
    %c0_2 = arith.constant 0 : index
    %c0_3 = arith.constant 0 : index
    %5 = vector.load %arg1[%c0_1, %c0_2, %c0_3] : memref<8x64x64xf32, #tpu.memory_space<vmem>>, vector<1x64x64xf32>
    %6 = vector.shape_cast %5 : vector<1x64x64xf32> to vector<64x64xf32>
    %cst_4 = arith.constant dense<0.000000e+00> : vector<2x64xf32>
    %7 = tpu.matmul %4, %6, %cst_4 {dimension_numbers = #tpu.dot_dimension_numbers<[1], [0], [0], [1], [0, 0, 1, 1], [], []>, precision = #tpu.contract_precision<fp32>} : vector<2x64xf32>, vector<64x64xf32>, vector<2x64xf32> -> vector<2x64xf32>
    %c0_5 = arith.constant 0 : index
    %c0_6 = arith.constant 0 : index
    %8 = vector.load %arg2[%c0_5, %c0_6] : memref<8x64xf32, #tpu.memory_space<vmem>>, vector<1x64xf32>
    %9 = vector.broadcast %8 : vector<1x64xf32> to vector<2x64xf32>
    %10 = arith.addf %7, %9 : vector<2x64xf32>
    %cst_7 = arith.constant 0.00999999977 : f32
    %11 = vector.broadcast %cst_7 : f32 to vector<2x64xf32>
    %12 = arith.mulf %11, %10 : vector<2x64xf32>
    %13 = arith.maximumf %10, %12 : vector<2x64xf32>
    %c1 = arith.constant 1 : index
    %c0_8 = arith.constant 0 : index
    %c0_9 = arith.constant 0 : index
    %14 = vector.load %arg1[%c1, %c0_8, %c0_9] : memref<8x64x64xf32, #tpu.memory_space<vmem>>, vector<1x64x64xf32>
    %15 = vector.shape_cast %14 : vector<1x64x64xf32> to vector<64x64xf32>
    %cst_10 = arith.constant dense<0.000000e+00> : vector<2x64xf32>
    %16 = tpu.matmul %13, %15, %cst_10 {dimension_numbers = #tpu.dot_dimension_numbers<[1], [0], [0], [1], [0, 0, 1, 1], [], []>, precision = #tpu.contract_precision<fp32>} : vector<2x64xf32>, vector<64x64xf32>, vector<2x64xf32> -> vector<2x64xf32>
    %c1_11 = arith.constant 1 : index
    %c0_12 = arith.constant 0 : index
    %17 = vector.load %arg2[%c1_11, %c0_12] : memref<8x64xf32, #tpu.memory_space<vmem>>, vector<1x64xf32>
    %18 = vector.broadcast %17 : vector<1x64xf32> to vector<2x64xf32>
    %19 = arith.addf %16, %18 : vector<2x64xf32>
    %cst_13 = arith.constant 0.00999999977 : f32
    %20 = vector.broadcast %cst_13 : f32 to vector<2x64xf32>
    %21 = arith.mulf %20, %19 : vector<2x64xf32>
    %22 = arith.maximumf %19, %21 : vector<2x64xf32>
    %c2 = arith.constant 2 : index
    %c0_14 = arith.constant 0 : index
    %c0_15 = arith.constant 0 : index
    %23 = vector.load %arg1[%c2, %c0_14, %c0_15] : memref<8x64x64xf32, #tpu.memory_space<vmem>>, vector<1x64x64xf32>
    %24 = vector.shape_cast %23 : vector<1x64x64xf32> to vector<64x64xf32>
    %cst_16 = arith.constant dense<0.000000e+00> : vector<2x64xf32>
    %25 = tpu.matmul %22, %24, %cst_16 {dimension_numbers = #tpu.dot_dimension_numbers<[1], [0], [0], [1], [0, 0, 1, 1], [], []>, precision = #tpu.contract_precision<fp32>} : vector<2x64xf32>, vector<64x64xf32>, vector<2x64xf32> -> vector<2x64xf32>
    %c2_17 = arith.constant 2 : index
    %c0_18 = arith.constant 0 : index
    %26 = vector.load %arg2[%c2_17, %c0_18] : memref<8x64xf32, #tpu.memory_space<vmem>>, vector<1x64xf32>
    %27 = vector.broadcast %26 : vector<1x64xf32> to vector<2x64xf32>
    %28 = arith.addf %25, %27 : vector<2x64xf32>
    %cst_19 = arith.constant 0.00999999977 : f32
    %29 = vector.broadcast %cst_19 : f32 to vector<2x64xf32>
    %30 = arith.mulf %29, %28 : vector<2x64xf32>
    %31 = arith.maximumf %28, %30 : vector<2x64xf32>
    %c3 = arith.constant 3 : index
    %c0_20 = arith.constant 0 : index
    %c0_21 = arith.constant 0 : index
    %32 = vector.load %arg1[%c3, %c0_20, %c0_21] : memref<8x64x64xf32, #tpu.memory_space<vmem>>, vector<1x64x64xf32>
    %33 = vector.shape_cast %32 : vector<1x64x64xf32> to vector<64x64xf32>
    %cst_22 = arith.constant dense<0.000000e+00> : vector<2x64xf32>
    %34 = tpu.matmul %31, %33, %cst_22 {dimension_numbers = #tpu.dot_dimension_numbers<[1], [0], [0], [1], [0, 0, 1, 1], [], []>, precision = #tpu.contract_precision<fp32>} : vector<2x64xf32>, vector<64x64xf32>, vector<2x64xf32> -> vector<2x64xf32>
    %c3_23 = arith.constant 3 : index
    %c0_24 = arith.constant 0 : index
    %35 = vector.load %arg2[%c3_23, %c0_24] : memref<8x64xf32, #tpu.memory_space<vmem>>, vector<1x64xf32>
    %36 = vector.broadcast %35 : vector<1x64xf32> to vector<2x64xf32>
    %37 = arith.addf %34, %36 : vector<2x64xf32>
    %38 = vector.extract_strided_slice %37 {offsets = [0, 0], sizes = [2, 3], strides = [1, 1]} : vector<2x64xf32> to vector<2x3xf32>
    %39 = math.tanh %38 : vector<2x3xf32>
    %40 = vector.extract_strided_slice %37 {offsets = [0, 3], sizes = [2, 4], strides = [1, 1]} : vector<2x64xf32> to vector<2x4xf32>
    %cst_25 = arith.constant dense<0.000000e+00> : vector<2xf32>
    %41 = vector.multi_reduction <add>, %39, %cst_25 [1] : vector<2x3xf32> to vector<2xf32>
    %42 = vector.shape_cast %41 : vector<2xf32> to vector<2x1xf32>
    %cst_26 = arith.constant 0.000000e+00 : f32
    %43 = vector.broadcast %cst_26 : f32 to vector<2x1xf32>
    %44 = arith.subf %43, %42 : vector<2x1xf32>
    %45 = tpu.concatenate %39, %44 in 1 : vector<2x3xf32>, vector<2x1xf32> -> vector<2x4xf32>
    %46 = math.exp %45 : vector<2x4xf32>
    %47 = arith.mulf %2, %46 : vector<2x4xf32>
    %48 = arith.addf %47, %40 : vector<2x4xf32>
    %49 = tpu.concatenate %48, %3 in 1 : vector<2x4xf32>, vector<2x60xf32> -> vector<2x64xf32>
    %c4 = arith.constant 4 : index
    %c0_27 = arith.constant 0 : index
    %c0_28 = arith.constant 0 : index
    %50 = vector.load %arg1[%c4, %c0_27, %c0_28] : memref<8x64x64xf32, #tpu.memory_space<vmem>>, vector<1x64x64xf32>
    %51 = vector.shape_cast %50 : vector<1x64x64xf32> to vector<64x64xf32>
    %cst_29 = arith.constant dense<0.000000e+00> : vector<2x64xf32>
    %52 = tpu.matmul %49, %51, %cst_29 {dimension_numbers = #tpu.dot_dimension_numbers<[1], [0], [0], [1], [0, 0, 1, 1], [], []>, precision = #tpu.contract_precision<fp32>} : vector<2x64xf32>, vector<64x64xf32>, vector<2x64xf32> -> vector<2x64xf32>
    %c4_30 = arith.constant 4 : index
    %c0_31 = arith.constant 0 : index
    %53 = vector.load %arg2[%c4_30, %c0_31] : memref<8x64xf32, #tpu.memory_space<vmem>>, vector<1x64xf32>
    %54 = vector.broadcast %53 : vector<1x64xf32> to vector<2x64xf32>
    %55 = arith.addf %52, %54 : vector<2x64xf32>
    %cst_32 = arith.constant 0.00999999977 : f32
    %56 = vector.broadcast %cst_32 : f32 to vector<2x64xf32>
    %57 = arith.mulf %56, %55 : vector<2x64xf32>
    %58 = arith.maximumf %55, %57 : vector<2x64xf32>
    %c5 = arith.constant 5 : index
    %c0_33 = arith.constant 0 : index
    %c0_34 = arith.constant 0 : index
    %59 = vector.load %arg1[%c5, %c0_33, %c0_34] : memref<8x64x64xf32, #tpu.memory_space<vmem>>, vector<1x64x64xf32>
    %60 = vector.shape_cast %59 : vector<1x64x64xf32> to vector<64x64xf32>
    %cst_35 = arith.constant dense<0.000000e+00> : vector<2x64xf32>
    %61 = tpu.matmul %58, %60, %cst_35 {dimension_numbers = #tpu.dot_dimension_numbers<[1], [0], [0], [1], [0, 0, 1, 1], [], []>, precision = #tpu.contract_precision<fp32>} : vector<2x64xf32>, vector<64x64xf32>, vector<2x64xf32> -> vector<2x64xf32>
    %c5_36 = arith.constant 5 : index
    %c0_37 = arith.constant 0 : index
    %62 = vector.load %arg2[%c5_36, %c0_37] : memref<8x64xf32, #tpu.memory_space<vmem>>, vector<1x64xf32>
    %63 = vector.broadcast %62 : vector<1x64xf32> to vector<2x64xf32>
    %64 = arith.addf %61, %63 : vector<2x64xf32>
    %cst_38 = arith.constant 0.00999999977 : f32
    %65 = vector.broadcast %cst_38 : f32 to vector<2x64xf32>
    %66 = arith.mulf %65, %64 : vector<2x64xf32>
    %67 = arith.maximumf %64, %66 : vector<2x64xf32>
    %c6 = arith.constant 6 : index
    %c0_39 = arith.constant 0 : index
    %c0_40 = arith.constant 0 : index
    %68 = vector.load %arg1[%c6, %c0_39, %c0_40] : memref<8x64x64xf32, #tpu.memory_space<vmem>>, vector<1x64x64xf32>
    %69 = vector.shape_cast %68 : vector<1x64x64xf32> to vector<64x64xf32>
    %cst_41 = arith.constant dense<0.000000e+00> : vector<2x64xf32>
    %70 = tpu.matmul %67, %69, %cst_41 {dimension_numbers = #tpu.dot_dimension_numbers<[1], [0], [0], [1], [0, 0, 1, 1], [], []>, precision = #tpu.contract_precision<fp32>} : vector<2x64xf32>, vector<64x64xf32>, vector<2x64xf32> -> vector<2x64xf32>
    %c6_42 = arith.constant 6 : index
    %c0_43 = arith.constant 0 : index
    %71 = vector.load %arg2[%c6_42, %c0_43] : memref<8x64xf32, #tpu.memory_space<vmem>>, vector<1x64xf32>
    %72 = vector.broadcast %71 : vector<1x64xf32> to vector<2x64xf32>
    %73 = arith.addf %70, %72 : vector<2x64xf32>
    %cst_44 = arith.constant 0.00999999977 : f32
    %74 = vector.broadcast %cst_44 : f32 to vector<2x64xf32>
    %75 = arith.mulf %74, %73 : vector<2x64xf32>
    %76 = arith.maximumf %73, %75 : vector<2x64xf32>
    %c7 = arith.constant 7 : index
    %c0_45 = arith.constant 0 : index
    %c0_46 = arith.constant 0 : index
    %77 = vector.load %arg1[%c7, %c0_45, %c0_46] : memref<8x64x64xf32, #tpu.memory_space<vmem>>, vector<1x64x64xf32>
    %78 = vector.shape_cast %77 : vector<1x64x64xf32> to vector<64x64xf32>
    %cst_47 = arith.constant dense<0.000000e+00> : vector<2x64xf32>
    %79 = tpu.matmul %76, %78, %cst_47 {dimension_numbers = #tpu.dot_dimension_numbers<[1], [0], [0], [1], [0, 0, 1, 1], [], []>, precision = #tpu.contract_precision<fp32>} : vector<2x64xf32>, vector<64x64xf32>, vector<2x64xf32> -> vector<2x64xf32>
    %c7_48 = arith.constant 7 : index
    %c0_49 = arith.constant 0 : index
    %80 = vector.load %arg2[%c7_48, %c0_49] : memref<8x64xf32, #tpu.memory_space<vmem>>, vector<1x64xf32>
    %81 = vector.broadcast %80 : vector<1x64xf32> to vector<2x64xf32>
    %82 = arith.addf %79, %81 : vector<2x64xf32>
    %83 = vector.extract_strided_slice %82 {offsets = [0, 0], sizes = [2, 3], strides = [1, 1]} : vector<2x64xf32> to vector<2x3xf32>
    %84 = math.tanh %83 : vector<2x3xf32>
    %85 = vector.extract_strided_slice %82 {offsets = [0, 3], sizes = [2, 4], strides = [1, 1]} : vector<2x64xf32> to vector<2x4xf32>
    %cst_50 = arith.constant dense<0.000000e+00> : vector<2xf32>
    %86 = vector.multi_reduction <add>, %84, %cst_50 [1] : vector<2x3xf32> to vector<2xf32>
    %87 = vector.shape_cast %86 : vector<2xf32> to vector<2x1xf32>
    %cst_51 = arith.constant 0.000000e+00 : f32
    %88 = vector.broadcast %cst_51 : f32 to vector<2x1xf32>
    %89 = arith.subf %88, %87 : vector<2x1xf32>
    %90 = tpu.concatenate %84, %89 in 1 : vector<2x3xf32>, vector<2x1xf32> -> vector<2x4xf32>
    %91 = math.exp %90 : vector<2x4xf32>
    %92 = arith.mulf %1, %91 : vector<2x4xf32>
    %93 = arith.addf %92, %85 : vector<2x4xf32>
    %94 = tpu.concatenate %48, %93 in 1 : vector<2x4xf32>, vector<2x4xf32> -> vector<2x8xf32>
    %c0_52 = arith.constant 0 : index
    %c0_53 = arith.constant 0 : index
    %95 = vector.load %arg3[%c0_52, %c0_53] : memref<2x8xf32, #tpu.memory_space<vmem>>, vector<2x8xf32>
    tpu.vector_store %arg3[%c0_52, %c0_53], %94 {strides = array<i32>} : memref<2x8xf32, #tpu.memory_space<vmem>>, vector<2x8xf32>,
    return
  }
}

</mosaic_0001>

<bundles_post_ra>
// kernel: gin_double_vector_coupling_forward.1
= control target key start
LH: loop header
LB: loop body
LE: loop exit
PB: predicated region body
PF: predicated region fallthrough
CT: control target
= control target key end

     0   :  { %8 = vsyncpa [#allocation3], 0  ;;  %s7538_s0 = inlined_call_operand.vmem [shape: f32[2,8], index: 0, kind: input, shape index: {}]   ;;  %s7539_s1 = inlined_call_operand.hbm [shape: f32[8,64,64], index: 1, kind: input, shape index: {}]   ;;  %s7540_s2 = inlined_call_operand.vmem [shape: f32[8,64], index: 2, kind: input, shape index: {}]   ;;  %s7541_s3 = inlined_call_operand.hbm [shape: f32[2,8], index: 3, kind: output, shape index: {}]  }
   0x1   :  { %9 = vsyncpa [#allocation4], 0  ;;  %s6622_s12 = smov [#allocation2]   ;;  %s6574_s16 = scalar_lea.hbm %s7539_s1, 8192 }
   0x2   :  { %s17_s13 = sshll.u32 %s6622_s12, 4  ;;  %p6575_p0 = scmp.ne.s32.totalorder %s7539_s1, %s6574_s16  ;;  %s18_s13 = int_to_ptr.vmem [resolvable:$true] %s17_s13 }
   0x3   :  { %p6578_p1 = scmp.lt.u32.totalorder %s6574_s16, %s7539_s1 }
   0x5   :  { %p6580_p2 = pnand %p6578_p1, %p6575_p0 }
   0x7   :  { %6583 = shalt.err (!%p6580_p2)
}
   0x8   :  { %s6584_s21 = scalar_lea.vmem %s18_s13, 8192  ;;  %p6589_p4 = scmp.lt.s32.totalorder %s18_s13, %s18_s13 }
   0x9   :  { %p6585_p3 = scmp.ne.s32.totalorder %s18_s13, %s6584_s21  ;;  %p6590_p5 = scmp.lt.s32.totalorder %s6584_s21, %s6584_s21 }
   0xb   :  { %p6591_p6 = por %p6590_p5, %p6589_p4 }
   0xd   :  { %p6592_p7 = pnand %p6591_p6, %p6585_p3 }
   0xf   :  { %6595 = shalt.err (!%p6592_p7)
}
  0x10   :  { %s6623_s22 = smov 128   ;;  %s6624_s23 = smov 8  }
  0x11   :  { %23 = dma.hbm_to_vmem [thread:$0]  %s7539_s1, 8192, %s18_s13, [#allocation3], %s6623_s22, %s6623_s22, %s6624_s23  }
  0x12   :  { %6618 = dma.done.wait [#allocation3], 8192  }
  0x13   :  { %6619 = vsyncadd [#allocation3], 4294959104  ;;  %v6625_v0 = vmov 0.0|0.0   ;;  %vm6626_vm0 = vmmov 0   ;;  %v6627_v1 = vmov 0.0   ;;  %v32_v2 = vld [vmem:[#allocation2] sm:$0xff] }
  0x14   :  { %5889 = vmatprep.subr.bf16.mxu0 %v6625_v0  ;;  %4993 = vmatprep.mubr.msk.f32.mxu0 %vm6626_vm0, %v6627_v1  ;;  %v33_v3 = vld [vmem:[#allocation2 + $0x8] sm:$0xff]  ;;  %v34_v4 = vld [vmem:[#allocation2 + $0x10] sm:$0xff]  ;;  %v50_v5 = vand.u32 4294901760, %v32_v2  ;;  %v35_v7 = vld [vmem:[#allocation2 + $0x18] sm:$0xff]  ;;  %vm30_vm1 = vcmask 31744   ;;  %vm45_vm2 = vcmask 523264  }
  0x15   :  { %5961 = vmatprep.subr.bf16.mxu1 %v6625_v0  ;;  %5107 = vmatprep.mubr.msk.f32.mxu1 %vm6626_vm0, %v6627_v1  ;;  %v53_v6 = vand.u32 4294901760, %v33_v3  ;;  %v56_v8 = vand.u32 4294901760, %v34_v4  ;;  %v36_v9 = vld [vmem:[#allocation2 + $0x20] sm:$0xff]  ;;  %v37_v10 = vld [vmem:[#allocation2 + $0x28] sm:$0xff]  ;;  %v59_v11 = vand.u32 4294901760, %v35_v7  ;;  %v38_v19 = vld [vmem:[#allocation2 + $0x30] sm:$0xff] }
  0x16   :  { %v6673_v13 = vsub.f32 %v32_v2, %v50_v5  ;;  %v29_v15 = vld [vmem:[%s7538_s0] sm:$0x3]  ;;  %v62_v17 = vand.u32 4294901760, %v36_v9  ;;  %v65_v18 = vand.u32 4294901760, %v37_v10  ;;  %v39_v20 = vld [vmem:[#allocation2 + $0x38] sm:$0xff]  ;;  %v68_v27 = vand.u32 4294901760, %v38_v19 }
  0x17   :  { %v6671_v12 = vpack.c.bf16 %v53_v6, %v50_v5  ;;  %v6675_v14 = vsub.f32 %v33_v3, %v53_v6  ;;  %v6680_v16 = vsub.f32 %v34_v4, %v56_v8  ;;  %v6683_v21 = vpack.c.bf16 %v59_v11, %v56_v8  ;;  %s6628_s8 = smov 1   ;;  %s6629_s9 = smov 4  }
  0x18   :  { %v6685_v22 = vsub.f32 %v35_v7, %v59_v11  ;;  %v31_v23 = vsel %vm30_vm1, %v29_v15, 0.0  ;;  %v135_v25 = vand.u32 4294901760, %v6673_v13  ;;  %v71_v28 = vand.u32 4294901760, %v39_v20  ;;  %s6630_s12 = smov 124   ;;  %s6631_s21 = smov 125  }
  0x19   :  { %5891 = vmatpush3.bf16.msra.mxu0 %v6671_v12  ;;  %v47_v24 = vsel %vm45_vm2, %v31_v23, 0  ;;  %v142_v26 = vand.u32 4294901760, %v6675_v14  ;;  %v6694_v30 = vpack.c.bf16 %v65_v18, %v62_v17  ;;  %v6696_v31 = vsub.f32 %v36_v9, %v62_v17  ;;  %v591_v17 = vld [vmem:[#allocation2 + $0x50] sm:$0xff]  ;;  %v594_v23 = vld [vmem:[#allocation2 + $0x68] sm:$0xff] }
  0x1a   :  { %5892 = vmatprep.subr.bf16.mxu0 %v6625_v0  ;;  %v6692_v29 = vand.u32 4294901760, %v47_v24  ;;  %v6698_v32 = vsub.f32 %v37_v10, %v65_v18  ;;  %v149_v33 = vand.u32 4294901760, %v6680_v16  ;;  %v136_v35 = vsub.f32 %v6673_v13, %v135_v25  ;;  %v592_v18 = vld [vmem:[#allocation2 + $0x58] sm:$0xff] }
  0x1b   :  { %v143_v36 = vsub.f32 %v6675_v14, %v142_v26  ;;  %v156_v37 = vand.u32 4294901760, %v6685_v22  ;;  %v6713_v38 = vpack.c.bf16 %v71_v28, %v68_v27  ;;  %v6715_v39 = vsub.f32 %v38_v19, %v68_v27 }
  0x1c   :  { %v6703_v34 = vsub.f32 %v47_v24, %v6692_v29  ;;  %v6718_v41 = vsub.f32 %v39_v20, %v71_v28  ;;  %v150_v42 = vsub.f32 %v6680_v16, %v149_v33  ;;  %v163_v43 = vand.u32 4294901760, %v6696_v31 }
  0x1d   :  { %5894 = vmatpush3.bf16.msra.mxu0 %v6683_v21  ;;  %v170_v44 = vand.u32 4294901760, %v6698_v32  ;;  %v137_v46 = vand.u32 4294901760, %v136_v35  ;;  %v144_v47 = vand.u32 4294901760, %v143_v36  ;;  %v157_v48 = vsub.f32 %v6685_v22, %v156_v37 }
  0x1e   :  { %5895 = vmatprep.subr.bf16.mxu0 %v6625_v0  ;;  %v124_v40 = vand.u32 4294901760, %v6703_v34  ;;  %v151_v50 = vand.u32 4294901760, %v150_v42  ;;  %v164_v51 = vsub.f32 %v6696_v31, %v163_v43  ;;  %v177_v52 = vand.u32 4294901760, %v6715_v39 }
  0x1f   :  { %v5902_v53 = vpack.c.bf16 %v144_v47, %v137_v46  ;;  %v158_v54 = vand.u32 4294901760, %v157_v48  ;;  %v171_v55 = vsub.f32 %v6698_v32, %v170_v44  ;;  %v184_v56 = vand.u32 4294901760, %v6718_v41 }
  0x20   :  { %v125_v45 = vsub.f32 %v6703_v34, %v124_v40  ;;  %v178_v57 = vsub.f32 %v6715_v39, %v177_v52  ;;  %v165_v59 = vand.u32 4294901760, %v164_v51  ;;  %v5914_v4 = vpack.c.bf16 %v6675_v14, %v6673_v13  ;;  %v590_v13 = vld [vmem:[#allocation2 + $0x48] sm:$0xff] }
  0x21   :  { %5897 = vmatpush3.bf16.msra.mxu0 %v6694_v30  ;;  %v5905_v58 = vpack.c.bf16 %v158_v54, %v151_v50  ;;  %v172_v60 = vand.u32 4294901760, %v171_v55  ;;  %v185_v61 = vsub.f32 %v6718_v41, %v184_v56  ;;  %v5917_v5 = vpack.c.bf16 %v6685_v22, %v6680_v16  ;;  %v593_v22 = vld [vmem:[#allocation2 + $0x60] sm:$0xff] }
  0x22   :  { %5898 = vmatprep.subr.bf16.mxu0 %v6625_v0  ;;  %v126_v49 = vand.u32 4294901760, %v125_v45  ;;  %v179_v63 = vand.u32 4294901760, %v178_v57  ;;  %v5920_v6 = vpack.c.bf16 %v6698_v32, %v6696_v31  ;;  %v5923_v7 = vpack.c.bf16 %v6718_v41, %v6715_v39 }
  0x23   :  { %v5908_v62 = vpack.c.bf16 %v172_v60, %v165_v59  ;;  %v186_v2 = vand.u32 4294901760, %v185_v61  ;;  %v5938_v8 = vpack.c.bf16 %v142_v26, %v135_v25  ;;  %v5941_v9 = vpack.c.bf16 %v156_v37, %v149_v33 }
  0x24   :  { %v5944_v10 = vpack.c.bf16 %v170_v44, %v163_v43  ;;  %v5947_v11 = vpack.c.bf16 %v184_v56, %v177_v52  ;;  %v609_v15 = vand.u32 4294901760, %v590_v13  ;;  %v612_v19 = vand.u32 4294901760, %v591_v17 }
  0x25   :  { %5900 = vmatpush3.bf16.msra.mxu0 %v6713_v38  ;;  %v5911_v3 = vpack.c.bf16 %v186_v2, %v179_v63  ;;  %v615_v20 = vand.u32 4294901760, %v592_v18  ;;  %v618_v24 = vand.u32 4294901760, %v593_v22  ;;  %v621_v25 = vand.u32 4294901760, %v594_v23 }
  0x26   :  { %5901 = vmatprep.subr.bf16.mxu0 %v6625_v0  ;;  %v6821_v27 = vsub.f32 %v590_v13, %v609_v15  ;;  %v6825_v31 = vsub.f32 %v591_v17, %v612_v19  ;;  %vm2255_vm3 = vcmask 17408   ;;  %vm2260_vm4 = vcmask 23552  }
  0x27   :  { %v6823_v28 = vpack.c.bf16 %v621_v25, %v618_v24  ;;  %v6827_v32 = vsub.f32 %v592_v18, %v615_v20  ;;  %v6830_v33 = vsub.f32 %v593_v22, %v618_v24  ;;  %vm4520_vm5 = vcmask 58368  }
  0x28   :  { %4994 = vmatmul.mubr.f32.vlgmr.msra.gmra.mrb[0].mxu0 %v126_v49  ;;  %v705_v45 = vand.u32 4294901760, %v6825_v31 }
  0x29   :  { %5903 = vmatpush3.bf16.msra.mxu0 %v5902_v53  ;;  %5012 = vmatprep.mubr.msk.f32.mxu0 %vm6626_vm0, %v6627_v1  ;;  %v712_v46 = vand.u32 4294901760, %v6827_v32  ;;  %v719_v53 = vand.u32 4294901760, %v6830_v33 }
  0x2a   :  { %5904 = vmatprep.subr.bf16.mxu0 %v6625_v0  ;;  %v706_v48 = vsub.f32 %v6825_v31, %v705_v45 }
  0x2b   :  { %v713_v49 = vsub.f32 %v6827_v32, %v712_v46  ;;  %v720_v56 = vsub.f32 %v6830_v33, %v719_v53 }
  0x2c   :  { %v707_v51 = vand.u32 4294901760, %v706_v48 }
  0x2d   :  { %5906 = vmatpush3.bf16.msra.mxu0 %v5905_v58  ;;  %v714_v52 = vand.u32 4294901760, %v713_v49  ;;  %v721_v58 = vand.u32 4294901760, %v720_v56 }
  0x2e   :  { %5907 = vmatprep.subr.bf16.mxu0 %v6625_v0 }
  0x2f   :  { %v5977_v55 = vpack.c.bf16 %v714_v52, %v707_v51 }
  0x31   :  { %5909 = vmatpush3.bf16.msra.mxu0 %v5908_v62 }
  0x32   :  { %5910 = vmatprep.subr.bf16.mxu0 %v6625_v0 }
  0x35   :  { %5912 = vmatpush3.bf16.msra.mxu0 %v5911_v3 }
  0x36   :  { %5913 = vmatprep.subr.bf16.mxu0 %v6625_v0 }
  0x38   :  { %5013 = vmatmul.mubr.f32.vlgmr.msra.gmra.mrb[0].mxu0 %v6692_v29 }
  0x39   :  { %5915 = vmatpush3.bf16.msra.mxu0 %v5914_v4  ;;  %5031 = vmatprep.mubr.msk.f32.mxu0 %vm6626_vm0, %v6627_v1 }
  0x3a   :  { %5916 = vmatprep.subr.bf16.mxu0 %v6625_v0 }
  0x3d   :  { %5918 = vmatpush3.bf16.msra.mxu0 %v5917_v5 }
  0x3e   :  { %5919 = vmatprep.subr.bf16.mxu0 %v6625_v0 }
  0x41   :  { %5921 = vmatpush3.bf16.msra.mxu0 %v5920_v6 }
  0x42   :  { %5922 = vmatprep.subr.bf16.mxu0 %v6625_v0 }
  0x45   :  { %5924 = vmatpush3.bf16.msra.mxu0 %v5923_v7  ;;  %v5989_v7 = vpack.c.bf16 %v6827_v32, %v6825_v31 }
  0x46   :  { %5925 = vmatprep.subr.bf16.mxu0 %v6625_v0 }
  0x48   :  { %5032 = vmatmul.mubr.f32.vlgmr.msra.gmra.mrb[0].mxu0 %v6703_v34  ;;  %v6832_v34 = vsub.f32 %v594_v23, %v621_v25 }
  0x49   :  { %5927 = vmatpush3.bf16.msra.mxu0 %v6671_v12  ;;  %5050 = vmatprep.mubr.msk.f32.mxu0 %vm6626_vm0, %v6627_v1 }
  0x4a   :  { %5928 = vmatprep.subr.bf16.mxu0 %v6625_v0  ;;  %v726_v54 = vand.u32 4294901760, %v6832_v34 }
  0x4c   :  { %v727_v57 = vsub.f32 %v6832_v34, %v726_v54 }
  0x4d   :  { %5930 = vmatpush3.bf16.msra.mxu0 %v6683_v21 }
  0x4e   :  { %5931 = vmatprep.subr.bf16.mxu0 %v6625_v0  ;;  %v728_v59 = vand.u32 4294901760, %v727_v57 }
  0x50   :  { %v5980_v62 = vpack.c.bf16 %v728_v59, %v721_v58 }
  0x51   :  { %5933 = vmatpush3.bf16.msra.mxu0 %v6694_v30 }
  0x52   :  { %5934 = vmatprep.subr.bf16.mxu0 %v6625_v0 }
  0x55   :  { %5936 = vmatpush3.bf16.msra.mxu0 %v6713_v38 }
  0x56   :  { %5937 = vmatprep.subr.bf16.mxu0 %v6625_v0 }
  0x58   :  { %5051 = vmatmul.mubr.f32.vlgmr.msra.gmra.mrb[0].mxu0 %v124_v40 }
  0x59   :  { %5939 = vmatpush3.bf16.msra.mxu0 %v5938_v8  ;;  %5069 = vmatprep.mubr.msk.f32.mxu0 %vm6626_vm0, %v6627_v1  ;;  %v5992_v8 = vpack.c.bf16 %v6832_v34, %v6830_v33  ;;  %v1148_v33 = vld [vmem:[#allocation2 + $0x98] sm:$0xff] }
  0x5a   :  { %5940 = vmatprep.subr.bf16.mxu0 %v6625_v0  ;;  %v1171_v34 = vand.u32 4294901760, %v1148_v33 }
  0x5d   :  { %5942 = vmatpush3.bf16.msra.mxu0 %v5941_v9 }
  0x5e   :  { %5943 = vmatprep.subr.bf16.mxu0 %v6625_v0 }
  0x61   :  { %5945 = vmatpush3.bf16.msra.mxu0 %v5944_v10 }
  0x62   :  { %5946 = vmatprep.subr.bf16.mxu0 %v6625_v0 }
  0x65   :  { %5948 = vmatpush3.bf16.msra.mxu0 %v5947_v11  ;;  %v6013_v11 = vpack.c.bf16 %v712_v46, %v705_v45  ;;  %v6927_v46 = vsub.f32 %v1148_v33, %v1171_v34 }
  0x66   :  { %5949 = vmatprep.subr.bf16.mxu0 %v6625_v0 }
  0x68   :  { %5070 = vmatmul.mubr.f32.vlgmr.msra.gmra.mrb[0].mxu0 %v6692_v29 }
  0x69   :  { %5951 = vmatpush3.bf16.msra.mxu0 %v6671_v12  ;;  %5088 = vmatprep.mubr.msk.f32.mxu0 %vm6626_vm0, %v6627_v1  ;;  %v589_v12 = vld [vmem:[#allocation2 + $0x40] sm:$0xff] }
  0x6a   :  { %5952 = vmatprep.subr.bf16.mxu0 %v6625_v0  ;;  %v606_v14 = vand.u32 4294901760, %v589_v12 }
  0x6c   :  { %v6811_v16 = vpack.c.bf16 %v609_v15, %v606_v14  ;;  %v6819_v26 = vsub.f32 %v589_v12, %v606_v14  ;;  %v6016_v12 = vpack.c.bf16 %v726_v54, %v719_v53  ;;  %v4537_v14 = vld [vmem:[%s7540_s2] ss:$0 sm:$0xff] }
  0x6d   :  { %5954 = vmatpush3.bf16.msra.mxu0 %v6683_v21  ;;  %v6815_v21 = vpack.c.bf16 %v615_v20, %v612_v19 }
  0x6e   :  { %5955 = vmatprep.subr.bf16.mxu0 %v6625_v0  ;;  %5963 = vmatpush3.bf16.msra.mxu1 %v6811_v16  ;;  %v691_v37 = vand.u32 4294901760, %v6819_v26  ;;  %v5986_v6 = vpack.c.bf16 %v6821_v27, %v6819_v26 }
  0x6f   :  { %5964 = vmatprep.subr.bf16.mxu1 %v6625_v0 }
  0x70   :  { %v692_v42 = vsub.f32 %v6819_v26, %v691_v37 }
  0x71   :  { %5957 = vmatpush3.bf16.msra.mxu0 %v6694_v30  ;;  %v596_v30 = vld [vmem:[#allocation2 + $0x78] sm:$0xff] }
  0x72   :  { %5958 = vmatprep.subr.bf16.mxu0 %v6625_v0  ;;  %5966 = vmatpush3.bf16.msra.mxu1 %v6815_v21  ;;  %v627_v36 = vand.u32 4294901760, %v596_v30  ;;  %v693_v44 = vand.u32 4294901760, %v692_v42 }
  0x73   :  { %5967 = vmatprep.subr.bf16.mxu1 %v6625_v0 }
  0x74   :  { %v6841_v41 = vsub.f32 %v596_v30, %v627_v36 }
  0x75   :  { %5960 = vmatpush3.bf16.msra.mxu0 %v6713_v38  ;;  %v698_v38 = vand.u32 4294901760, %v6821_v27 }
  0x76   :  { %6033 = vmatprep.subr.bf16.mxu0 %v6625_v0  ;;  %5969 = vmatpush3.bf16.msra.mxu1 %v6823_v28  ;;  %v740_v61 = vand.u32 4294901760, %v6841_v41 }
  0x77   :  { %5970 = vmatprep.subr.bf16.mxu1 %v6625_v0  ;;  %v699_v43 = vsub.f32 %v6821_v27, %v698_v38  ;;  %v6010_v10 = vpack.c.bf16 %v698_v38, %v691_v37  ;;  %v1150_v37 = vld [vmem:[#allocation2 + $0xa8] sm:$0xff] }
  0x78   :  { %5089 = vmatmul.mubr.f32.vlgmr.msra.gmra.mrb[0].mxu0 %v6692_v29  ;;  %v595_v29 = vld [vmem:[#allocation2 + $0x70] sm:$0xff]  ;;  %v741_v2 = vsub.f32 %v6841_v41, %v740_v61 }
  0x79   :  { %5221 = vmatprep.mubr.msk.f32.mxu0 %vm6626_vm0, %v6627_v1  ;;  %v624_v35 = vand.u32 4294901760, %v595_v29  ;;  %v700_v47 = vand.u32 4294901760, %v699_v43  ;;  %v1151_v43 = vld [vmem:[#allocation2 + $0xb0] sm:$0xff] }
  0x7a   :  { %v742_v4 = vand.u32 4294901760, %v741_v2  ;;  %v1180_v49 = vand.u32 4294901760, %v1151_v43 }
  0x7b   :  { %v6837_v39 = vpack.c.bf16 %v627_v36, %v624_v35  ;;  %v6839_v40 = vsub.f32 %v595_v29, %v624_v35  ;;  %v5974_v50 = vpack.c.bf16 %v700_v47, %v693_v44  ;;  %v1146_v29 = vld [vmem:[#allocation2 + $0x88] sm:$0xff]  ;;  %v1149_v36 = vld [vmem:[#allocation2 + $0xa0] sm:$0xff]  ;;  %v1152_v44 = vld [vmem:[#allocation2 + $0xb8] sm:$0xff] }
  0x7c   :  { %v1165_v31 = vand.u32 4294901760, %v1146_v29  ;;  %v1174_v38 = vand.u32 4294901760, %v1149_v36  ;;  %v6939_v54 = vsub.f32 %v1151_v43, %v1180_v49  ;;  %v1702_v43 = vld [vmem:[#allocation2 + $0xc8] sm:$0xff] }
  0x7d   :  { %5972 = vmatpush3.bf16.msra.mxu1 %v6837_v39  ;;  %v733_v60 = vand.u32 4294901760, %v6839_v40  ;;  %v5995_v9 = vpack.c.bf16 %v6841_v41, %v6839_v40 }
  0x7e   :  { %5973 = vmatprep.subr.bf16.mxu1 %v6625_v0  ;;  %v6921_v41 = vsub.f32 %v1146_v29, %v1165_v31  ;;  %v6930_v47 = vsub.f32 %v1149_v36, %v1174_v38 }
  0x7f   :  { %v734_v63 = vsub.f32 %v6839_v40, %v733_v60  ;;  %v6019_v13 = vpack.c.bf16 %v740_v61, %v733_v60  ;;  %v1268_v60 = vand.u32 4294901760, %v6927_v46 }
  0x80   :  { %v1254_v52 = vand.u32 4294901760, %v6921_v41 }
  0x81   :  { %v735_v3 = vand.u32 4294901760, %v734_v63  ;;  %v1269_v63 = vsub.f32 %v6927_v46, %v1268_v60 }
  0x82   :  { %v1255_v57 = vsub.f32 %v6921_v41, %v1254_v52 }
  0x83   :  { %v5983_v5 = vpack.c.bf16 %v742_v4, %v735_v3  ;;  %v1270_v4 = vand.u32 4294901760, %v1269_v63 }
  0x84   :  { %v1256_v61 = vand.u32 4294901760, %v1255_v57  ;;  %v1707_v57 = vld [vmem:[#allocation2 + $0xf0] sm:$0xff] }
  0x85   :  { %v1736_v63 = vand.u32 4294901760, %v1707_v57 }
 0x14b   :  { %v582_v15 = vpop.f32.mrb[0].mxu0 }
 0x14c   :  { %v6465_v17 = vadd.f32 %v4537_v14, %v582_v15  ;;  %v5090_v18 = vpop.f32.mrb[1].mxu0 }
 0x14e   :  { %v586_v19 = vmul.f32 0.01, %v6465_v17 }
 0x150   :  { %v587_v20 = vmax.f32 %v6465_v17, %v586_v19 }
 0x152   :  { %v603_v22 = vsel %vm45_vm2, %v587_v20, 0 }
 0x153   :  { %v678_v23 = vand.u32 4294901760, %v603_v22 }
 0x155   :  { %v679_v24 = vsub.f32 %v603_v22, %v678_v23 }
 0x157   :  { %v680_v25 = vand.u32 4294901760, %v679_v24 }
 0x159   :  { %v681_v26 = vsub.f32 %v679_v24, %v680_v25 }
 0x15b   :  { %v682_v27 = vand.u32 4294901760, %v681_v26 }
 0x15d   :  { %5108 = vmatmul.mubr.f32.vlgmr.msra.gmra.mrb[0].mxu1 %v682_v27 }
 0x15e   :  { %5975 = vmatpush3.bf16.msra.mxu1 %v5974_v50  ;;  %5126 = vmatprep.mubr.msk.f32.mxu1 %vm6626_vm0, %v6627_v1  ;;  %v1183_v50 = vand.u32 4294901760, %v1152_v44 }
 0x15f   :  { %5976 = vmatprep.subr.bf16.mxu1 %v6625_v0 }
 0x160   :  { %v6937_v53 = vpack.c.bf16 %v1183_v50, %v1180_v49 }
 0x162   :  { %5978 = vmatpush3.bf16.msra.mxu1 %v5977_v55  ;;  %v6941_v55 = vsub.f32 %v1152_v44, %v1183_v50  ;;  %v1705_v50 = vld [vmem:[#allocation2 + $0xe0] sm:$0xff] }
 0x163   :  { %5979 = vmatprep.subr.bf16.mxu1 %v6625_v0 }
 0x166   :  { %5981 = vmatpush3.bf16.msra.mxu1 %v5980_v62 }
 0x167   :  { %5982 = vmatprep.subr.bf16.mxu1 %v6625_v0 }
 0x16a   :  { %5984 = vmatpush3.bf16.msra.mxu1 %v5983_v5  ;;  %v1275_v5 = vand.u32 4294901760, %v6930_v47 }
 0x16b   :  { %5985 = vmatprep.subr.bf16.mxu1 %v6625_v0 }
 0x16d   :  { %5127 = vmatmul.mubr.f32.vlgmr.msra.gmra.mrb[0].mxu1 %v678_v23 }
 0x16e   :  { %5987 = vmatpush3.bf16.msra.mxu1 %v5986_v6  ;;  %5145 = vmatprep.mubr.msk.f32.mxu1 %vm6626_vm0, %v6627_v1 }
 0x16f   :  { %5988 = vmatprep.subr.bf16.mxu1 %v6625_v0 }
 0x172   :  { %5990 = vmatpush3.bf16.msra.mxu1 %v5989_v7 }
 0x173   :  { %5991 = vmatprep.subr.bf16.mxu1 %v6625_v0 }
 0x176   :  { %5993 = vmatpush3.bf16.msra.mxu1 %v5992_v8  ;;  %v1276_v8 = vsub.f32 %v6930_v47, %v1275_v5 }
 0x177   :  { %5994 = vmatprep.subr.bf16.mxu1 %v6625_v0 }
 0x17a   :  { %5996 = vmatpush3.bf16.msra.mxu1 %v5995_v9 }
 0x17b   :  { %5997 = vmatprep.subr.bf16.mxu1 %v6625_v0 }
 0x17d   :  { %5146 = vmatmul.mubr.f32.vlgmr.msra.gmra.mrb[0].mxu1 %v679_v24 }
 0x17e   :  { %5999 = vmatpush3.bf16.msra.mxu1 %v6811_v16  ;;  %5164 = vmatprep.mubr.msk.f32.mxu1 %vm6626_vm0, %v6627_v1 }
 0x17f   :  { %6000 = vmatprep.subr.bf16.mxu1 %v6625_v0 }
 0x182   :  { %6002 = vmatpush3.bf16.msra.mxu1 %v6815_v21 }
 0x183   :  { %6003 = vmatprep.subr.bf16.mxu1 %v6625_v0 }
 0x186   :  { %6005 = vmatpush3.bf16.msra.mxu1 %v6823_v28 }
 0x187   :  { %6006 = vmatprep.subr.bf16.mxu1 %v6625_v0 }
 0x18a   :  { %6008 = vmatpush3.bf16.msra.mxu1 %v6837_v39 }
 0x18b   :  { %6009 = vmatprep.subr.bf16.mxu1 %v6625_v0 }
 0x18d   :  { %5165 = vmatmul.mubr.f32.vlgmr.msra.gmra.mrb[0].mxu1 %v680_v25  ;;  %v6067_v25 = vpack.c.bf16 %v6941_v55, %v6939_v54 }
 0x18e   :  { %6011 = vmatpush3.bf16.msra.mxu1 %v6010_v10  ;;  %5183 = vmatprep.mubr.msk.f32.mxu1 %vm6626_vm0, %v6627_v1  ;;  %v1277_v10 = vand.u32 4294901760, %v1276_v8 }
 0x18f   :  { %6012 = vmatprep.subr.bf16.mxu1 %v6625_v0 }
 0x192   :  { %6014 = vmatpush3.bf16.msra.mxu1 %v6013_v11 }
 0x193   :  { %6015 = vmatprep.subr.bf16.mxu1 %v6625_v0 }
 0x196   :  { %6017 = vmatpush3.bf16.msra.mxu1 %v6016_v12  ;;  %v1289_v12 = vand.u32 4294901760, %v6939_v54 }
 0x197   :  { %6018 = vmatprep.subr.bf16.mxu1 %v6625_v0 }
 0x198   :  { %v1290_v15 = vsub.f32 %v6939_v54, %v1289_v12 }
 0x19a   :  { %6020 = vmatpush3.bf16.msra.mxu1 %v6019_v13  ;;  %v1296_v13 = vand.u32 4294901760, %v6941_v55  ;;  %v1291_v18 = vand.u32 4294901760, %v1290_v15 }
 0x19b   :  { %6021 = vmatprep.subr.bf16.mxu1 %v6625_v0 }
 0x19c   :  { %v1297_v17 = vsub.f32 %v6941_v55, %v1296_v13  ;;  %v6091_v29 = vpack.c.bf16 %v1296_v13, %v1289_v12 }
 0x19d   :  { %5184 = vmatmul.mubr.f32.vlgmr.msra.gmra.mrb[0].mxu1 %v678_v23 }
 0x19e   :  { %6023 = vmatpush3.bf16.msra.mxu1 %v6811_v16  ;;  %5202 = vmatprep.mubr.msk.f32.mxu1 %vm6626_vm0, %v6627_v1  ;;  %v1145_v16 = vld [vmem:[#allocation2 + $0x80] sm:$0xff]  ;;  %v1298_v19 = vand.u32 4294901760, %v1297_v17 }
 0x19f   :  { %6024 = vmatprep.subr.bf16.mxu1 %v6625_v0  ;;  %v1162_v30 = vand.u32 4294901760, %v1145_v16 }
 0x1a0   :  { %v6055_v20 = vpack.c.bf16 %v1298_v19, %v1291_v18 }
 0x1a1   :  { %v6911_v32 = vpack.c.bf16 %v1165_v31, %v1162_v30  ;;  %v6919_v40 = vsub.f32 %v1145_v16, %v1162_v30  ;;  %v4538_v30 = vld [vmem:[%s7540_s2 + $0x1] ss:$0 sm:$0xff] }
 0x1a2   :  { %6026 = vmatpush3.bf16.msra.mxu1 %v6815_v21  ;;  %v1147_v21 = vld [vmem:[#allocation2 + $0x90] sm:$0xff] }
 0x1a3   :  { %6027 = vmatprep.subr.bf16.mxu1 %v6625_v0  ;;  %6035 = vmatpush3.bf16.msra.mxu0 %v6911_v32  ;;  %v1247_v51 = vand.u32 4294901760, %v6919_v40  ;;  %v6058_v22 = vpack.c.bf16 %v6921_v41, %v6919_v40 }
 0x1a4   :  { %6036 = vmatprep.subr.bf16.mxu0 %v6625_v0 }
 0x1a5   :  { %v1248_v56 = vsub.f32 %v6919_v40, %v1247_v51  ;;  %v6082_v26 = vpack.c.bf16 %v1254_v52, %v1247_v51  ;;  %v1706_v51 = vld [vmem:[#allocation2 + $0xe8] sm:$0xff]  ;;  %v1730_v52 = vand.u32 4294901760, %v1705_v50 }
 0x1a6   :  { %6029 = vmatpush3.bf16.msra.mxu1 %v6823_v28  ;;  %v1168_v28 = vand.u32 4294901760, %v1147_v21 }
 0x1a7   :  { %6030 = vmatprep.subr.bf16.mxu1 %v6625_v0  ;;  %v1249_v58 = vand.u32 4294901760, %v1248_v56 }
 0x1a8   :  { %v6915_v35 = vpack.c.bf16 %v1171_v34, %v1168_v28  ;;  %v6925_v45 = vsub.f32 %v1147_v21, %v1168_v28 }
 0x1a9   :  { %v6046_v2 = vpack.c.bf16 %v1256_v61, %v1249_v58  ;;  %v1708_v58 = vld [vmem:[#allocation2 + $0xf8] sm:$0xff]  ;;  %v7030_v61 = vsub.f32 %v1705_v50, %v1730_v52 }
 0x1aa   :  { %6032 = vmatpush3.bf16.msra.mxu1 %v6837_v39  ;;  %6038 = vmatpush3.bf16.msra.mxu0 %v6915_v35  ;;  %v1177_v39 = vand.u32 4294901760, %v1150_v37  ;;  %v1261_v59 = vand.u32 4294901760, %v6925_v45 }
 0x1ab   :  { %6105 = vmatprep.subr.bf16.mxu1 %v6625_v0  ;;  %6039 = vmatprep.subr.bf16.mxu0 %v6625_v0 }
 0x1ac   :  { %v6923_v42 = vpack.c.bf16 %v1177_v39, %v1174_v38  ;;  %v6932_v48 = vsub.f32 %v1150_v37, %v1177_v39  ;;  %v1262_v62 = vsub.f32 %v6925_v45, %v1261_v59  ;;  %v6085_v27 = vpack.c.bf16 %v1268_v60, %v1261_v59 }
 0x1ad   :  { %5203 = vmatmul.mubr.f32.vlgmr.msra.gmra.mrb[0].mxu1 %v678_v23  ;;  %v6061_v23 = vpack.c.bf16 %v6927_v46, %v6925_v45  ;;  %v1721_v45 = vand.u32 4294901760, %v1702_v43 }
 0x1ae   :  { %5335 = vmatprep.mubr.msk.f32.mxu1 %vm6626_vm0, %v6627_v1  ;;  %6041 = vmatpush3.bf16.msra.mxu0 %v6923_v42  ;;  %v1263_v3 = vand.u32 4294901760, %v1262_v62  ;;  %v1282_v6 = vand.u32 4294901760, %v6932_v48  ;;  %v6064_v24 = vpack.c.bf16 %v6932_v48, %v6930_v47  ;;  %v1704_v47 = vld [vmem:[#allocation2 + $0xd8] sm:$0xff] }
 0x1af   :  { %6042 = vmatprep.subr.bf16.mxu0 %v6625_v0  ;;  %v7021_v55 = vsub.f32 %v1702_v43, %v1721_v45 }
 0x1b0   :  { %v6049_v7 = vpack.c.bf16 %v1270_v4, %v1263_v3  ;;  %v1283_v9 = vsub.f32 %v6932_v48, %v1282_v6  ;;  %v6088_v16 = vpack.c.bf16 %v1282_v6, %v1275_v5  ;;  %v1727_v48 = vand.u32 4294901760, %v1704_v47 }
 0x1b1   :  { %v1810_v4 = vand.u32 4294901760, %v7021_v55  ;;  %v7039_v6 = vsub.f32 %v1707_v57, %v1736_v63 }
 0x1b2   :  { %6044 = vmatpush3.bf16.msra.mxu0 %v6937_v53  ;;  %v1284_v11 = vand.u32 4294901760, %v1283_v9  ;;  %v7027_v60 = vsub.f32 %v1704_v47, %v1727_v48 }
 0x1b3   :  { %6045 = vmatprep.subr.bf16.mxu0 %v6625_v0  ;;  %v1811_v9 = vsub.f32 %v7021_v55, %v1810_v4 }
 0x1b4   :  { %v6052_v14 = vpack.c.bf16 %v1284_v11, %v1277_v10  ;;  %v1824_v12 = vand.u32 4294901760, %v7027_v60 }
 0x1b5   :  { %v1812_v13 = vand.u32 4294901760, %v1811_v9 }
 0x1b6   :  { %v1825_v15 = vsub.f32 %v7027_v60, %v1824_v12 }
 0x1b8   :  { %v1826_v19 = vand.u32 4294901760, %v1825_v15  ;;  %v2284_v15 = vld [vmem:[#allocation2 + $0x120] sm:$0xff] }
 0x280   :  { %v1138_v31 = vpop.f32.mrb[0].mxu1 }
 0x281   :  { %v6466_v21 = vadd.f32 %v4538_v30, %v1138_v31  ;;  %v5204_v33 = vpop.f32.mrb[1].mxu1 }
 0x283   :  { %v1142_v28 = vmul.f32 0.01, %v6466_v21 }
 0x285   :  { %v1143_v34 = vmax.f32 %v6466_v21, %v1142_v28 }
 0x287   :  { %v1159_v36 = vsel %vm45_vm2, %v1143_v34, 0 }
 0x288   :  { %v1234_v37 = vand.u32 4294901760, %v1159_v36 }
 0x28a   :  { %v1235_v38 = vsub.f32 %v1159_v36, %v1234_v37 }
 0x28c   :  { %v1236_v39 = vand.u32 4294901760, %v1235_v38 }
 0x28e   :  { %v1237_v40 = vsub.f32 %v1235_v38, %v1236_v39 }
 0x290   :  { %v1238_v41 = vand.u32 4294901760, %v1237_v40 }
 0x292   :  { %5222 = vmatmul.mubr.f32.vlgmr.msra.gmra.mrb[2].mxu0 %v1238_v41 }
 0x293   :  { %6047 = vmatpush3.bf16.msra.mxu0 %v6046_v2  ;;  %5240 = vmatprep.mubr.msk.f32.mxu0 %vm6626_vm0, %v6627_v1  ;;  %v1739_v2 = vand.u32 4294901760, %v1708_v58 }
 0x294   :  { %6048 = vmatprep.subr.bf16.mxu0 %v6625_v0 }
 0x295   :  { %v7037_v5 = vpack.c.bf16 %v1739_v2, %v1736_v63 }
 0x297   :  { %6050 = vmatpush3.bf16.msra.mxu0 %v6049_v7  ;;  %v7041_v7 = vsub.f32 %v1708_v58, %v1739_v2  ;;  %v2280_v2 = vld [vmem:[#allocation2 + $0x100] sm:$0xff] }
 0x298   :  { %6051 = vmatprep.subr.bf16.mxu0 %v6625_v0 }
 0x29b   :  { %6053 = vmatpush3.bf16.msra.mxu0 %v6052_v14 }
 0x29c   :  { %6054 = vmatprep.subr.bf16.mxu0 %v6625_v0 }
 0x29f   :  { %6056 = vmatpush3.bf16.msra.mxu0 %v6055_v20  ;;  %v1831_v20 = vand.u32 4294901760, %v7030_v61 }
 0x2a0   :  { %6057 = vmatprep.subr.bf16.mxu0 %v6625_v0 }
 0x2a2   :  { %5241 = vmatmul.mubr.f32.vlgmr.msra.gmra.mrb[2].mxu0 %v1234_v37 }
 0x2a3   :  { %6059 = vmatpush3.bf16.msra.mxu0 %v6058_v22  ;;  %5259 = vmatprep.mubr.msk.f32.mxu0 %vm6626_vm0, %v6627_v1 }
 0x2a4   :  { %6060 = vmatprep.subr.bf16.mxu0 %v6625_v0 }
 0x2a7   :  { %6062 = vmatpush3.bf16.msra.mxu0 %v6061_v23 }
 0x2a8   :  { %6063 = vmatprep.subr.bf16.mxu0 %v6625_v0 }
 0x2ab   :  { %6065 = vmatpush3.bf16.msra.mxu0 %v6064_v24  ;;  %v1832_v24 = vsub.f32 %v7030_v61, %v1831_v20 }
 0x2ac   :  { %6066 = vmatprep.subr.bf16.mxu0 %v6625_v0 }
 0x2af   :  { %6068 = vmatpush3.bf16.msra.mxu0 %v6067_v25 }
 0x2b0   :  { %6069 = vmatprep.subr.bf16.mxu0 %v6625_v0 }
 0x2b2   :  { %5260 = vmatmul.mubr.f32.vlgmr.msra.gmra.mrb[2].mxu0 %v1235_v38 }
 0x2b3   :  { %6071 = vmatpush3.bf16.msra.mxu0 %v6911_v32  ;;  %5278 = vmatprep.mubr.msk.f32.mxu0 %vm6626_vm0, %v6627_v1 }
 0x2b4   :  { %6072 = vmatprep.subr.bf16.mxu0 %v6625_v0 }
 0x2b7   :  { %6074 = vmatpush3.bf16.msra.mxu0 %v6915_v35 }
 0x2b8   :  { %6075 = vmatprep.subr.bf16.mxu0 %v6625_v0 }
 0x2bb   :  { %6077 = vmatpush3.bf16.msra.mxu0 %v6923_v42 }
 0x2bc   :  { %6078 = vmatprep.subr.bf16.mxu0 %v6625_v0 }
 0x2bf   :  { %6080 = vmatpush3.bf16.msra.mxu0 %v6937_v53 }
 0x2c0   :  { %6081 = vmatprep.subr.bf16.mxu0 %v6625_v0 }
 0x2c2   :  { %5279 = vmatmul.mubr.f32.vlgmr.msra.gmra.mrb[2].mxu0 %v1236_v39  ;;  %v6139_v39 = vpack.c.bf16 %v7041_v7, %v7039_v6 }
 0x2c3   :  { %6083 = vmatpush3.bf16.msra.mxu0 %v6082_v26  ;;  %5297 = vmatprep.mubr.msk.f32.mxu0 %vm6626_vm0, %v6627_v1  ;;  %v1833_v26 = vand.u32 4294901760, %v1832_v24 }
 0x2c4   :  { %6084 = vmatprep.subr.bf16.mxu0 %v6625_v0 }
 0x2c7   :  { %6086 = vmatpush3.bf16.msra.mxu0 %v6085_v27 }
 0x2c8   :  { %6087 = vmatprep.subr.bf16.mxu0 %v6625_v0 }
 0x2cb   :  { %6089 = vmatpush3.bf16.msra.mxu0 %v6088_v16  ;;  %v1845_v16 = vand.u32 4294901760, %v7039_v6 }
 0x2cc   :  { %6090 = vmatprep.subr.bf16.mxu0 %v6625_v0 }
 0x2cd   :  { %v1846_v31 = vsub.f32 %v7039_v6, %v1845_v16 }
 0x2cf   :  { %6092 = vmatpush3.bf16.msra.mxu0 %v6091_v29  ;;  %v1852_v29 = vand.u32 4294901760, %v7041_v7  ;;  %v1847_v33 = vand.u32 4294901760, %v1846_v31 }
 0x2d0   :  { %6093 = vmatprep.subr.bf16.mxu0 %v6625_v0 }
 0x2d1   :  { %v1853_v21 = vsub.f32 %v7041_v7, %v1852_v29  ;;  %v6163_v43 = vpack.c.bf16 %v1852_v29, %v1845_v16 }
 0x2d2   :  { %5298 = vmatmul.mubr.f32.vlgmr.msra.gmra.mrb[2].mxu0 %v1234_v37 }
 0x2d3   :  { %6095 = vmatpush3.bf16.msra.mxu0 %v6911_v32  ;;  %5316 = vmatprep.mubr.msk.f32.mxu0 %vm6626_vm0, %v6627_v1  ;;  %v1701_v32 = vld [vmem:[#allocation2 + $0xc0] sm:$0xff]  ;;  %v1854_v28 = vand.u32 4294901760, %v1853_v21 }
 0x2d4   :  { %6096 = vmatprep.subr.bf16.mxu0 %v6625_v0  ;;  %v1718_v44 = vand.u32 4294901760, %v1701_v32 }
 0x2d5   :  { %v6127_v34 = vpack.c.bf16 %v1854_v28, %v1847_v33 }
 0x2d6   :  { %v7011_v46 = vpack.c.bf16 %v1721_v45, %v1718_v44  ;;  %v7019_v54 = vsub.f32 %v1701_v32, %v1718_v44  ;;  %v4539_v44 = vld [vmem:[%s7540_s2 + $0x2] ss:$0 sm:$0xff] }
 0x2d7   :  { %6098 = vmatpush3.bf16.msra.mxu0 %v6915_v35  ;;  %v1703_v35 = vld [vmem:[#allocation2 + $0xd0] sm:$0xff] }
 0x2d8   :  { %6099 = vmatprep.subr.bf16.mxu0 %v6625_v0  ;;  %6107 = vmatpush3.bf16.msra.mxu1 %v7011_v46  ;;  %v1803_v3 = vand.u32 4294901760, %v7019_v54  ;;  %v6130_v36 = vpack.c.bf16 %v7021_v55, %v7019_v54 }
 0x2d9   :  { %6108 = vmatprep.subr.bf16.mxu1 %v6625_v0 }
 0x2da   :  { %v1804_v8 = vsub.f32 %v7019_v54, %v1803_v3  ;;  %v6154_v40 = vpack.c.bf16 %v1810_v4, %v1803_v3  ;;  %v2281_v3 = vld [vmem:[#allocation2 + $0x108] sm:$0xff]  ;;  %v2297_v4 = vand.u32 4294901760, %v2280_v2 }
 0x2db   :  { %6101 = vmatpush3.bf16.msra.mxu0 %v6923_v42  ;;  %v1724_v42 = vand.u32 4294901760, %v1703_v35 }
 0x2dc   :  { %6102 = vmatprep.subr.bf16.mxu0 %v6625_v0  ;;  %v1805_v10 = vand.u32 4294901760, %v1804_v8  ;;  %v7118_v7 = vsub.f32 %v2280_v2, %v2297_v4 }
 0x2dd   :  { %v7015_v49 = vpack.c.bf16 %v1727_v48, %v1724_v42  ;;  %v7025_v59 = vsub.f32 %v1703_v35, %v1724_v42 }
 0x2de   :  { %v6118_v17 = vpack.c.bf16 %v1812_v13, %v1805_v10  ;;  %v2282_v10 = vld [vmem:[#allocation2 + $0x110] sm:$0xff] }
 0x2df   :  { %6104 = vmatpush3.bf16.msra.mxu0 %v6937_v53  ;;  %6110 = vmatpush3.bf16.msra.mxu1 %v7015_v49  ;;  %v1733_v53 = vand.u32 4294901760, %v1706_v51  ;;  %v1817_v11 = vand.u32 4294901760, %v7025_v59 }
 0x2e0   :  { %6177 = vmatprep.subr.bf16.mxu0 %v6625_v0  ;;  %6111 = vmatprep.subr.bf16.mxu1 %v6625_v0 }
 0x2e1   :  { %v7023_v56 = vpack.c.bf16 %v1733_v53, %v1730_v52  ;;  %v7032_v62 = vsub.f32 %v1706_v51, %v1733_v53  ;;  %v1818_v14 = vsub.f32 %v7025_v59, %v1817_v11  ;;  %v6157_v41 = vpack.c.bf16 %v1824_v12, %v1817_v11  ;;  %v2283_v11 = vld [vmem:[#allocation2 + $0x118] sm:$0xff] }
 0x2e2   :  { %5317 = vmatmul.mubr.f32.vlgmr.msra.gmra.mrb[2].mxu0 %v1234_v37  ;;  %v6133_v37 = vpack.c.bf16 %v7027_v60, %v7025_v59  ;;  %v2303_v12 = vand.u32 4294901760, %v2282_v10  ;;  %v2306_v13 = vand.u32 4294901760, %v2283_v11 }
 0x2e3   :  { %5449 = vmatprep.mubr.msk.f32.mxu0 %vm6626_vm0, %v6627_v1  ;;  %6113 = vmatpush3.bf16.msra.mxu1 %v7023_v56  ;;  %v1819_v18 = vand.u32 4294901760, %v1818_v14  ;;  %v1838_v22 = vand.u32 4294901760, %v7032_v62  ;;  %v6136_v38 = vpack.c.bf16 %v7032_v62, %v7030_v61 }
 0x2e4   :  { %6114 = vmatprep.subr.bf16.mxu1 %v6625_v0  ;;  %v7125_v14 = vpack.c.bf16 %v2306_v13, %v2303_v12  ;;  %v7135_v16 = vsub.f32 %v2282_v10, %v2303_v12  ;;  %v7137_v29 = vsub.f32 %v2283_v11, %v2306_v13 }
 0x2e5   :  { %v6121_v23 = vpack.c.bf16 %v1826_v19, %v1819_v18  ;;  %v1839_v25 = vsub.f32 %v7032_v62, %v1838_v22  ;;  %v6160_v32 = vpack.c.bf16 %v1838_v22, %v1831_v20  ;;  %v2309_v18 = vand.u32 4294901760, %v2284_v15  ;;  %v2286_v22 = vld [vmem:[#allocation2 + $0x130] sm:$0xff] }
 0x2e6   :  { %v2315_v24 = vand.u32 4294901760, %v2286_v22 }
 0x2e7   :  { %6116 = vmatpush3.bf16.msra.mxu1 %v7037_v5  ;;  %v1840_v27 = vand.u32 4294901760, %v1839_v25 }
 0x2e8   :  { %6117 = vmatprep.subr.bf16.mxu1 %v6625_v0  ;;  %v7145_v33 = vsub.f32 %v2286_v22, %v2315_v24 }
 0x2e9   :  { %v6124_v30 = vpack.c.bf16 %v1840_v27, %v1833_v26  ;;  %v2382_v26 = vand.u32 4294901760, %v7118_v7 }
 0x3b5   :  { %v1694_v45 = vpop.f32.mrb[2].mxu0 }
 0x3b6   :  { %v6467_v35 = vadd.f32 %v4539_v44, %v1694_v45  ;;  %v5318_v47 = vpop.f32.mrb[3].mxu0 }
 0x3b8   :  { %v1698_v42 = vmul.f32 0.01, %v6467_v35 }
 0x3ba   :  { %v1699_v48 = vmax.f32 %v6467_v35, %v1698_v42 }
 0x3bc   :  { %v1715_v50 = vsel %vm45_vm2, %v1699_v48, 0 }
 0x3bd   :  { %v1790_v51 = vand.u32 4294901760, %v1715_v50 }
 0x3bf   :  { %v1791_v52 = vsub.f32 %v1715_v50, %v1790_v51 }
 0x3c1   :  { %v1792_v53 = vand.u32 4294901760, %v1791_v52 }
 0x3c3   :  { %v1793_v54 = vsub.f32 %v1791_v52, %v1792_v53 }
 0x3c5   :  { %v1794_v55 = vand.u32 4294901760, %v1793_v54 }
 0x3c7   :  { %5336 = vmatmul.mubr.f32.vlgmr.msra.gmra.mrb[2].mxu1 %v1794_v55 }
 0x3c8   :  { %6119 = vmatpush3.bf16.msra.mxu1 %v6118_v17  ;;  %5354 = vmatprep.mubr.msk.f32.mxu1 %vm6626_vm0, %v6627_v1  ;;  %v2285_v17 = vld [vmem:[#allocation2 + $0x128] sm:$0xff] }
 0x3c9   :  { %6120 = vmatprep.subr.bf16.mxu1 %v6625_v0  ;;  %v2312_v19 = vand.u32 4294901760, %v2285_v17 }
 0x3cb   :  { %v7129_v20 = vpack.c.bf16 %v2312_v19, %v2309_v18  ;;  %v7141_v31 = vsub.f32 %v2285_v17, %v2312_v19 }
 0x3cc   :  { %6122 = vmatpush3.bf16.msra.mxu1 %v6121_v23  ;;  %v2287_v23 = vld [vmem:[#allocation2 + $0x138] sm:$0xff] }
 0x3cd   :  { %6123 = vmatprep.subr.bf16.mxu1 %v6625_v0  ;;  %v2318_v25 = vand.u32 4294901760, %v2287_v23 }
 0x3cf   :  { %v7143_v21 = vpack.c.bf16 %v2318_v25, %v2315_v24  ;;  %v7147_v28 = vsub.f32 %v2287_v23, %v2318_v25  ;;  %v2837_v23 = vld [vmem:[#allocation2 + $0x148] sm:$0xff] }
 0x3d0   :  { %6125 = vmatpush3.bf16.msra.mxu1 %v6124_v30  ;;  %v7139_v30 = vsub.f32 %v2284_v15, %v2309_v18  ;;  %v2856_v25 = vand.u32 4294901760, %v2837_v23 }
 0x3d1   :  { %6126 = vmatprep.subr.bf16.mxu1 %v6625_v0 }
 0x3d4   :  { %6128 = vmatpush3.bf16.msra.mxu1 %v6127_v34  ;;  %v2383_v34 = vsub.f32 %v7118_v7, %v2382_v26 }
 0x3d5   :  { %6129 = vmatprep.subr.bf16.mxu1 %v6625_v0 }
 0x3d7   :  { %5355 = vmatmul.mubr.f32.vlgmr.msra.gmra.mrb[2].mxu1 %v1790_v51 }
 0x3d8   :  { %6131 = vmatpush3.bf16.msra.mxu1 %v6130_v36  ;;  %5373 = vmatprep.mubr.msk.f32.mxu1 %vm6626_vm0, %v6627_v1 }
 0x3d9   :  { %6132 = vmatprep.subr.bf16.mxu1 %v6625_v0 }
 0x3dc   :  { %6134 = vmatpush3.bf16.msra.mxu1 %v6133_v37 }
 0x3dd   :  { %6135 = vmatprep.subr.bf16.mxu1 %v6625_v0 }
 0x3e0   :  { %6137 = vmatpush3.bf16.msra.mxu1 %v6136_v38  ;;  %v6572_v38 = vld [vmem:[%s7538_s0] sm:$0x3] }
 0x3e1   :  { %6138 = vmatprep.subr.bf16.mxu1 %v6625_v0 }
 0x3e4   :  { %6140 = vmatpush3.bf16.msra.mxu1 %v6139_v39 }
 0x3e5   :  { %6141 = vmatprep.subr.bf16.mxu1 %v6625_v0 }
 0x3e7   :  { %5374 = vmatmul.mubr.f32.vlgmr.msra.gmra.mrb[2].mxu1 %v1791_v52  ;;  %v2417_v52 = vand.u32 4294901760, %v7141_v31 }
 0x3e8   :  { %6143 = vmatpush3.bf16.msra.mxu1 %v7011_v46  ;;  %5392 = vmatprep.mubr.msk.f32.mxu1 %vm6626_vm0, %v6627_v1 }
 0x3e9   :  { %6144 = vmatprep.subr.bf16.mxu1 %v6625_v0  ;;  %v2418_v55 = vsub.f32 %v7141_v31, %v2417_v52 }
 0x3ec   :  { %6146 = vmatpush3.bf16.msra.mxu1 %v7015_v49 }
 0x3ed   :  { %6147 = vmatprep.subr.bf16.mxu1 %v6625_v0 }
 0x3f0   :  { %6149 = vmatpush3.bf16.msra.mxu1 %v7023_v56 }
 0x3f1   :  { %6150 = vmatprep.subr.bf16.mxu1 %v6625_v0 }
 0x3f4   :  { %6152 = vmatpush3.bf16.msra.mxu1 %v7037_v5 }
 0x3f5   :  { %6153 = vmatprep.subr.bf16.mxu1 %v6625_v0 }
 0x3f7   :  { %5393 = vmatmul.mubr.f32.vlgmr.msra.gmra.mrb[2].mxu1 %v1792_v53 }
 0x3f8   :  { %6155 = vmatpush3.bf16.msra.mxu1 %v6154_v40  ;;  %5411 = vmatprep.mubr.msk.f32.mxu1 %vm6626_vm0, %v6627_v1  ;;  %v2384_v40 = vand.u32 4294901760, %v2383_v34  ;;  %v7231_v34 = vsub.f32 %v2837_v23, %v2856_v25 }
 0x3f9   :  { %6156 = vmatprep.subr.bf16.mxu1 %v6625_v0 }
 0x3fc   :  { %6158 = vmatpush3.bf16.msra.mxu1 %v6157_v41  ;;  %v2396_v41 = vand.u32 4294901760, %v7135_v16 }
 0x3fd   :  { %6159 = vmatprep.subr.bf16.mxu1 %v6625_v0 }
 0x3fe   :  { %v2397_v35 = vsub.f32 %v7135_v16, %v2396_v41 }
 0x400   :  { %6161 = vmatpush3.bf16.msra.mxu1 %v6160_v32  ;;  %v2403_v32 = vand.u32 4294901760, %v7137_v29  ;;  %v2398_v48 = vand.u32 4294901760, %v2397_v35  ;;  %v2945_v35 = vand.u32 4294901760, %v7231_v34 }
 0x401   :  { %6162 = vmatprep.subr.bf16.mxu1 %v6625_v0 }
 0x402   :  { %v2404_v47 = vsub.f32 %v7137_v29, %v2403_v32  ;;  %v6229_v10 = vpack.c.bf16 %v2403_v32, %v2396_v41 }
 0x404   :  { %6164 = vmatpush3.bf16.msra.mxu1 %v6163_v43  ;;  %v2405_v50 = vand.u32 4294901760, %v2404_v47 }
 0x405   :  { %6165 = vmatprep.subr.bf16.mxu1 %v6625_v0 }
 0x406   :  { %v6193_v53 = vpack.c.bf16 %v2405_v50, %v2398_v48 }
 0x407   :  { %5412 = vmatmul.mubr.f32.vlgmr.msra.gmra.mrb[2].mxu1 %v1790_v51 }
 0x408   :  { %6167 = vmatpush3.bf16.msra.mxu1 %v7011_v46  ;;  %5430 = vmatprep.mubr.msk.f32.mxu1 %vm6626_vm0, %v6627_v1  ;;  %v4540_v46 = vld [vmem:[%s7540_s2 + $0x3] ss:$0 sm:$0xff] }
 0x409   :  { %6168 = vmatprep.subr.bf16.mxu1 %v6625_v0 }
 0x40c   :  { %6170 = vmatpush3.bf16.msra.mxu1 %v7015_v49 }
 0x40d   :  { %6171 = vmatprep.subr.bf16.mxu1 %v6625_v0 }
 0x410   :  { %6173 = vmatpush3.bf16.msra.mxu1 %v7023_v56 }
 0x411   :  { %6174 = vmatprep.subr.bf16.mxu1 %v6625_v0 }
 0x414   :  { %6176 = vmatpush3.bf16.msra.mxu1 %v7037_v5  ;;  %v2300_v5 = vand.u32 4294901760, %v2281_v3 }
 0x415   :  { %6249 = vmatprep.subr.bf16.mxu1 %v6625_v0 }
 0x416   :  { %v7116_v6 = vpack.c.bf16 %v2300_v5, %v2297_v4  ;;  %v7120_v8 = vsub.f32 %v2281_v3, %v2300_v5  ;;  %v6205_v3 = vpack.c.bf16 %v7137_v29, %v7135_v16  ;;  %v6208_v4 = vpack.c.bf16 %v7141_v31, %v7139_v30  ;;  %v2841_v31 = vld [vmem:[#allocation2 + $0x168] sm:$0xff] }
 0x417   :  { %5431 = vmatmul.mubr.f32.vlgmr.msra.gmra.mrb[2].mxu1 %v1790_v51  ;;  %v2410_v51 = vand.u32 4294901760, %v7139_v30  ;;  %v6211_v5 = vpack.c.bf16 %v7147_v28, %v7145_v33 }
 0x418   :  { %5563 = vmatprep.mubr.msk.f32.mxu1 %vm6626_vm0, %v6627_v1  ;;  %6179 = vmatpush3.bf16.msra.mxu0 %v7116_v6  ;;  %v2389_v27 = vand.u32 4294901760, %v7120_v8  ;;  %v6202_v2 = vpack.c.bf16 %v7120_v8, %v7118_v7 }
 0x419   :  { %6180 = vmatprep.subr.bf16.mxu0 %v6625_v0  ;;  %v2411_v54 = vsub.f32 %v7139_v30, %v2410_v51  ;;  %v6232_v11 = vpack.c.bf16 %v2417_v52, %v2410_v51  ;;  %v2840_v30 = vld [vmem:[#allocation2 + $0x160] sm:$0xff]  ;;  %v2946_v51 = vsub.f32 %v7231_v34, %v2945_v35 }
 0x41a   :  { %v2390_v37 = vsub.f32 %v7120_v8, %v2389_v27 }
 0x41c   :  { %6182 = vmatpush3.bf16.msra.mxu0 %v7125_v14  ;;  %v2391_v44 = vand.u32 4294901760, %v2390_v37  ;;  %v2842_v37 = vld [vmem:[#allocation2 + $0x170] sm:$0xff] }
 0x41d   :  { %6183 = vmatprep.subr.bf16.mxu0 %v6625_v0 }
 0x41e   :  { %v6190_v42 = vpack.c.bf16 %v2391_v44, %v2384_v40 }
 0x420   :  { %6185 = vmatpush3.bf16.msra.mxu0 %v7129_v20 }
 0x421   :  { %6186 = vmatprep.subr.bf16.mxu0 %v6625_v0 }
 0x424   :  { %6188 = vmatpush3.bf16.msra.mxu0 %v7143_v21 }
 0x425   :  { %6189 = vmatprep.subr.bf16.mxu0 %v6625_v0 }
 0x4ea   :  { %v2250_v57 = vpop.f32.mrb[2].mxu1 }
 0x4eb   :  { %v6468_v49 = vadd.f32 %v4540_v46, %v2250_v57  ;;  %v5432_v58 = vpop.f32.mrb[3].mxu1  ;;  %v2412_v46 = vand.u32 4294901760, %v2411_v54  ;;  %v2419_v57 = vand.u32 4294901760, %v2418_v55  ;;  %v2947_v55 = vand.u32 4294901760, %v2946_v51 }
 0x4ec   :  { %v2431_v58 = vand.u32 4294901760, %v7147_v28 }
 0x4ed   :  { %6564 = vtanh.f32 %v6468_v49  ;;  %2270 = vrot.lane.b32.xlu1 %v6468_v49, %s6628_s8  ;;  %v2424_v49 = vand.u32 4294901760, %v7145_v33 }
 0x4ef   :  { %v6235_v12 = vpack.c.bf16 %v2431_v58, %v2424_v49 }
 0x4f7   :  { %v6565_v56 = vpop.eup %6564 }
 0x4f8   :  { %v2256_v59 = vsel %vm2255_vm3, %v6565_v56, 0.0 }
 0x4f9   :  { %2257 = vadd.xlane.f32.xlu0 %v2256_v59  ;;  %v2425_v59 = vsub.f32 %v7145_v33, %v2424_v49  ;;  %v2868_v33 = vand.u32 4294901760, %v2841_v31 }
 0x4fb   :  { %v7242_v32 = vsub.f32 %v2841_v31, %v2868_v33 }
 0x55f   :  { %v2271_v43 = vpop.permute.xlu1 %2270 }
 0x586   :  { %v2258_v60 = vpop.xlane.xlu0 %2257 }
 0x587   :  { %v2259_v61 = vsub.f32 0.0, %v2258_v60  ;;  %v2432_v60 = vsub.f32 %v7147_v28, %v2431_v58 }
 0x589   :  { %v2261_v62 = vsel %vm2260_vm4, %v6565_v56, %v2259_v61  ;;  %v6196_v56 = vpack.c.bf16 %v2419_v57, %v2412_v46  ;;  %v2426_v61 = vand.u32 4294901760, %v2425_v59 }
 0x58a   :  { %v2262_v63 = vmul.f32 1.442695, %v2261_v62  ;;  %v2433_v62 = vand.u32 4294901760, %v2432_v60  ;;  %v2973_v60 = vand.u32 4294901760, %v7242_v32 }
 0x58c   :  { %6566 = vpow2.f32 %v2262_v63  ;;  %v6199_v63 = vpack.c.bf16 %v2433_v62, %v2426_v61 }
 0x596   :  { %v6567_v9 = vpop.eup %6566 }
 0x597   :  { %2265 = vrot.lane.b32.xlu0 %v6567_v9, %s6629_s9  ;;  %v6226_v9 = vpack.c.bf16 %v2389_v27, %v2382_v26  ;;  %v2839_v27 = vld [vmem:[#allocation2 + $0x158] sm:$0xff] }
 0x598   :  { %v2862_v16 = vand.u32 4294901760, %v2839_v27 }
 0x59a   :  { %v7237_v40 = vsub.f32 %v2839_v27, %v2862_v16 }
 0x59c   :  { %v2959_v54 = vand.u32 4294901760, %v7237_v40 }
 0x59e   :  { %v2960_v57 = vsub.f32 %v7237_v40, %v2959_v54 }
 0x609   :  { %v2266_v36 = vpop.permute.xlu0 %2265 }
 0x60a   :  { %v2268_v39 = vmul.f32 %v6572_v38, %v2266_v36  ;;  %v2843_v38 = vld [vmem:[#allocation2 + $0x178] sm:$0xff] }
 0x60b   :  { %v2874_v44 = vand.u32 4294901760, %v2843_v38 }
 0x60c   :  { %v2273_v45 = vadd.f32 %v2271_v43, %v2268_v39  ;;  %v2871_v43 = vand.u32 4294901760, %v2842_v37 }
 0x60d   :  { %v7251_v48 = vsub.f32 %v2843_v38, %v2874_v44  ;;  %v3393_v38 = vld [vmem:[#allocation2 + $0x188] sm:$0xff] }
 0x60e   :  { %2275 = vrot.lane.b32.xlu1 %v2273_v45, %s6630_s12  ;;  %v7247_v47 = vpack.c.bf16 %v2874_v44, %v2871_v43 }
 0x680   :  { %v7176_v13 = vpop.permute.xlu1 %2275 }
 0x681   :  { %v2278_v15 = vsel %vm30_vm1, %v7176_v13, 0.0 }
 0x682   :  { %v2294_v7 = vsel %vm45_vm2, %v2278_v15, 0 }
 0x683   :  { %v2369_v8 = vand.u32 4294901760, %v2294_v7 }
 0x685   :  { %v2370_v17 = vsub.f32 %v2294_v7, %v2369_v8 }
 0x687   :  { %v2371_v18 = vand.u32 4294901760, %v2370_v17 }
 0x689   :  { %v2372_v19 = vsub.f32 %v2370_v17, %v2371_v18 }
 0x68b   :  { %v2373_v22 = vand.u32 4294901760, %v2372_v19 }
 0x68d   :  { %5450 = vmatmul.mubr.f32.vlgmr.msra.gmra.mrb[4].mxu0 %v2373_v22 }
 0x68e   :  { %6191 = vmatpush3.bf16.msra.mxu0 %v6190_v42  ;;  %5468 = vmatprep.mubr.msk.f32.mxu0 %vm6626_vm0, %v6627_v1  ;;  %v7249_v42 = vsub.f32 %v2842_v37, %v2871_v43 }
 0x68f   :  { %6192 = vmatprep.subr.bf16.mxu0 %v6625_v0 }
 0x690   :  { %v6283_v19 = vpack.c.bf16 %v7251_v48, %v7249_v42 }
 0x692   :  { %6194 = vmatpush3.bf16.msra.mxu0 %v6193_v53 }
 0x693   :  { %6195 = vmatprep.subr.bf16.mxu0 %v6625_v0 }
 0x696   :  { %6197 = vmatpush3.bf16.msra.mxu0 %v6196_v56  ;;  %v2961_v56 = vand.u32 4294901760, %v2960_v57 }
 0x697   :  { %6198 = vmatprep.subr.bf16.mxu0 %v6625_v0 }
 0x69a   :  { %6200 = vmatpush3.bf16.msra.mxu0 %v6199_v63  ;;  %v2974_v63 = vsub.f32 %v7242_v32, %v2973_v60 }
 0x69b   :  { %6201 = vmatprep.subr.bf16.mxu0 %v6625_v0 }
 0x69d   :  { %5469 = vmatmul.mubr.f32.vlgmr.msra.gmra.mrb[4].mxu0 %v2369_v8 }
 0x69e   :  { %6203 = vmatpush3.bf16.msra.mxu0 %v6202_v2  ;;  %5487 = vmatprep.mubr.msk.f32.mxu0 %vm6626_vm0, %v6627_v1 }
 0x69f   :  { %6204 = vmatprep.subr.bf16.mxu0 %v6625_v0 }
 0x6a2   :  { %6206 = vmatpush3.bf16.msra.mxu0 %v6205_v3  ;;  %v2975_v3 = vand.u32 4294901760, %v2974_v63 }
 0x6a3   :  { %6207 = vmatprep.subr.bf16.mxu0 %v6625_v0 }
 0x6a6   :  { %6209 = vmatpush3.bf16.msra.mxu0 %v6208_v4  ;;  %v2980_v4 = vand.u32 4294901760, %v7249_v42 }
 0x6a7   :  { %6210 = vmatprep.subr.bf16.mxu0 %v6625_v0 }
 0x6aa   :  { %6212 = vmatpush3.bf16.msra.mxu0 %v6211_v5  ;;  %v2987_v5 = vand.u32 4294901760, %v7251_v48 }
 0x6ab   :  { %6213 = vmatprep.subr.bf16.mxu0 %v6625_v0 }
 0x6ad   :  { %5488 = vmatmul.mubr.f32.vlgmr.msra.gmra.mrb[4].mxu0 %v2370_v17 }
 0x6ae   :  { %6215 = vmatpush3.bf16.msra.mxu0 %v7116_v6  ;;  %5506 = vmatprep.mubr.msk.f32.mxu0 %vm6626_vm0, %v6627_v1 }
 0x6af   :  { %6216 = vmatprep.subr.bf16.mxu0 %v6625_v0 }
 0x6b2   :  { %6218 = vmatpush3.bf16.msra.mxu0 %v7125_v14 }
 0x6b3   :  { %6219 = vmatprep.subr.bf16.mxu0 %v6625_v0 }
 0x6b6   :  { %6221 = vmatpush3.bf16.msra.mxu0 %v7129_v20 }
 0x6b7   :  { %6222 = vmatprep.subr.bf16.mxu0 %v6625_v0 }
 0x6ba   :  { %6224 = vmatpush3.bf16.msra.mxu0 %v7143_v21 }
 0x6bb   :  { %6225 = vmatprep.subr.bf16.mxu0 %v6625_v0 }
 0x6bd   :  { %5507 = vmatmul.mubr.f32.vlgmr.msra.gmra.mrb[4].mxu0 %v2371_v18 }
 0x6be   :  { %6227 = vmatpush3.bf16.msra.mxu0 %v6226_v9  ;;  %5525 = vmatprep.mubr.msk.f32.mxu0 %vm6626_vm0, %v6627_v1 }
 0x6bf   :  { %6228 = vmatprep.subr.bf16.mxu0 %v6625_v0 }
 0x6c2   :  { %6230 = vmatpush3.bf16.msra.mxu0 %v6229_v10  ;;  %v2981_v10 = vsub.f32 %v7249_v42, %v2980_v4 }
 0x6c3   :  { %6231 = vmatprep.subr.bf16.mxu0 %v6625_v0 }
 0x6c6   :  { %6233 = vmatpush3.bf16.msra.mxu0 %v6232_v11  ;;  %v2988_v11 = vsub.f32 %v7251_v48, %v2987_v5 }
 0x6c7   :  { %6234 = vmatprep.subr.bf16.mxu0 %v6625_v0 }
 0x6c8   :  { %v2989_v15 = vand.u32 4294901760, %v2988_v11 }
 0x6ca   :  { %6236 = vmatpush3.bf16.msra.mxu0 %v6235_v12  ;;  %v2982_v12 = vand.u32 4294901760, %v2981_v10 }
 0x6cb   :  { %6237 = vmatprep.subr.bf16.mxu0 %v6625_v0 }
 0x6cc   :  { %v6271_v7 = vpack.c.bf16 %v2989_v15, %v2982_v12 }
 0x6cd   :  { %5526 = vmatmul.mubr.f32.vlgmr.msra.gmra.mrb[4].mxu0 %v2369_v8 }
 0x6ce   :  { %6239 = vmatpush3.bf16.msra.mxu0 %v7116_v6  ;;  %5544 = vmatprep.mubr.msk.f32.mxu0 %vm6626_vm0, %v6627_v1  ;;  %v2836_v6 = vld [vmem:[#allocation2 + $0x140] sm:$0xff] }
 0x6cf   :  { %6240 = vmatprep.subr.bf16.mxu0 %v6625_v0  ;;  %v2853_v24 = vand.u32 4294901760, %v2836_v6 }
 0x6d1   :  { %v7221_v26 = vpack.c.bf16 %v2856_v25, %v2853_v24  ;;  %v7229_v28 = vsub.f32 %v2836_v6, %v2853_v24  ;;  %v6307_v24 = vpack.c.bf16 %v2987_v5, %v2980_v4  ;;  %v4541_v25 = vld [vmem:[%s7540_s2 + $0x4] ss:$0 sm:$0xff] }
 0x6d2   :  { %6242 = vmatpush3.bf16.msra.mxu0 %v7125_v14  ;;  %v2838_v14 = vld [vmem:[#allocation2 + $0x150] sm:$0xff] }
 0x6d3   :  { %6243 = vmatprep.subr.bf16.mxu0 %v6625_v0  ;;  %6251 = vmatpush3.bf16.msra.mxu1 %v7221_v26  ;;  %v2938_v45 = vand.u32 4294901760, %v7229_v28 }
 0x6d4   :  { %6252 = vmatprep.subr.bf16.mxu1 %v6625_v0 }
 0x6d5   :  { %v2939_v50 = vsub.f32 %v7229_v28, %v2938_v45  ;;  %v6298_v22 = vpack.c.bf16 %v2945_v35, %v2938_v45  ;;  %v3396_v45 = vld [vmem:[#allocation2 + $0x1a0] sm:$0xff]  ;;  %v3397_v35 = vld [vmem:[#allocation2 + $0x1a8] sm:$0xff] }
 0x6d6   :  { %6245 = vmatpush3.bf16.msra.mxu0 %v7129_v20  ;;  %v2859_v20 = vand.u32 4294901760, %v2838_v14  ;;  %v3424_v42 = vand.u32 4294901760, %v3397_v35 }
 0x6d7   :  { %6246 = vmatprep.subr.bf16.mxu0 %v6625_v0  ;;  %v2940_v52 = vand.u32 4294901760, %v2939_v50 }
 0x6d8   :  { %v7225_v29 = vpack.c.bf16 %v2862_v16, %v2859_v20  ;;  %v7235_v39 = vsub.f32 %v2838_v14, %v2859_v20  ;;  %v7342_v57 = vsub.f32 %v3397_v35, %v3424_v42 }
 0x6d9   :  { %v6262_v49 = vpack.c.bf16 %v2947_v55, %v2940_v52  ;;  %v3398_v52 = vld [vmem:[#allocation2 + $0x1b0] sm:$0xff] }
 0x6da   :  { %6248 = vmatpush3.bf16.msra.mxu0 %v7143_v21  ;;  %6254 = vmatpush3.bf16.msra.mxu1 %v7225_v29  ;;  %v2865_v21 = vand.u32 4294901760, %v2840_v30  ;;  %v2952_v53 = vand.u32 4294901760, %v7235_v39  ;;  %v6277_v17 = vpack.c.bf16 %v7237_v40, %v7235_v39  ;;  %v3412_v40 = vand.u32 4294901760, %v3393_v38 }
 0x6db   :  { %6321 = vmatprep.subr.bf16.mxu0 %v6625_v0  ;;  %6255 = vmatprep.subr.bf16.mxu1 %v6625_v0 }
 0x6dc   :  { %v7233_v36 = vpack.c.bf16 %v2868_v33, %v2865_v21  ;;  %v7240_v41 = vsub.f32 %v2840_v30, %v2865_v21  ;;  %v2953_v46 = vsub.f32 %v7235_v39, %v2952_v53  ;;  %v6301_v6 = vpack.c.bf16 %v2959_v54, %v2952_v53  ;;  %v3399_v53 = vld [vmem:[#allocation2 + $0x1b8] sm:$0xff] }
 0x6dd   :  { %5545 = vmatmul.mubr.f32.vlgmr.msra.gmra.mrb[4].mxu0 %v2369_v8  ;;  %v6274_v8 = vpack.c.bf16 %v7231_v34, %v7229_v28  ;;  %v7331_v50 = vsub.f32 %v3393_v38, %v3412_v40 }
 0x6de   :  { %5677 = vmatprep.mubr.msk.f32.mxu0 %vm6626_vm0, %v6627_v1  ;;  %6257 = vmatpush3.bf16.msra.mxu1 %v7233_v36  ;;  %v2954_v58 = vand.u32 4294901760, %v2953_v46  ;;  %v2966_v59 = vand.u32 4294901760, %v7240_v41  ;;  %v6280_v18 = vpack.c.bf16 %v7242_v32, %v7240_v41  ;;  %v3395_v32 = vld [vmem:[#allocation2 + $0x198] sm:$0xff] }
 0x6df   :  { %6258 = vmatprep.subr.bf16.mxu1 %v6625_v0  ;;  %v3418_v43 = vand.u32 4294901760, %v3395_v32 }
 0x6e0   :  { %v6265_v61 = vpack.c.bf16 %v2961_v56, %v2954_v58  ;;  %v2967_v62 = vsub.f32 %v7240_v41, %v2966_v59  ;;  %v6304_v23 = vpack.c.bf16 %v2973_v60, %v2966_v59  ;;  %v3430_v58 = vand.u32 4294901760, %v3399_v53 }
 0x6e1   :  { %v7337_v55 = vsub.f32 %v3395_v32, %v3418_v43  ;;  %v3501_v59 = vand.u32 4294901760, %v7331_v50 }
 0x6e2   :  { %6260 = vmatpush3.bf16.msra.mxu1 %v7247_v47  ;;  %v2968_v2 = vand.u32 4294901760, %v2967_v62  ;;  %v7351_v62 = vsub.f32 %v3399_v53, %v3430_v58  ;;  %v3948_v53 = vld [vmem:[#allocation2 + $0x1c0] sm:$0xff] }
 0x6e3   :  { %6261 = vmatprep.subr.bf16.mxu1 %v6625_v0  ;;  %v3515_v5 = vand.u32 4294901760, %v7337_v55 }
 0x6e4   :  { %v6268_v9 = vpack.c.bf16 %v2975_v3, %v2968_v2  ;;  %v3502_v2 = vsub.f32 %v7331_v50, %v3501_v59 }
 0x6e5   :  { %v3516_v11 = vsub.f32 %v7337_v55, %v3515_v5 }
 0x7b0   :  { %v2829_v14 = vpop.f32.mrb[4].mxu0 }
 0x7b1   :  { %v6469_v27 = vadd.f32 %v4541_v25, %v2829_v14  ;;  %v5546_v20 = vpop.f32.mrb[5].mxu0  ;;  %v3543_v25 = vand.u32 4294901760, %v7351_v62 }
 0x7b3   :  { %v2833_v16 = vmul.f32 0.01, %v6469_v27  ;;  %v3544_v20 = vsub.f32 %v7351_v62, %v3543_v25 }
 0x7b5   :  { %v2834_v30 = vmax.f32 %v6469_v27, %v2833_v16 }
 0x7b7   :  { %v2850_v31 = vsel %vm45_vm2, %v2834_v30, 0  ;;  %v3545_v30 = vand.u32 4294901760, %v3544_v20 }
 0x7b8   :  { %v2925_v21 = vand.u32 4294901760, %v2850_v31 }
 0x7ba   :  { %v2926_v33 = vsub.f32 %v2850_v31, %v2925_v21 }
 0x7bc   :  { %v2927_v28 = vand.u32 4294901760, %v2926_v33 }
 0x7be   :  { %v2928_v34 = vsub.f32 %v2926_v33, %v2927_v28 }
 0x7c0   :  { %v2929_v37 = vand.u32 4294901760, %v2928_v34 }
 0x7c2   :  { %5564 = vmatmul.mubr.f32.vlgmr.msra.gmra.mrb[4].mxu1 %v2929_v37 }
 0x7c3   :  { %6263 = vmatpush3.bf16.msra.mxu1 %v6262_v49  ;;  %5582 = vmatprep.mubr.msk.f32.mxu1 %vm6626_vm0, %v6627_v1  ;;  %v3427_v49 = vand.u32 4294901760, %v3398_v52 }
 0x7c4   :  { %6264 = vmatprep.subr.bf16.mxu1 %v6625_v0 }
 0x7c5   :  { %v7347_v60 = vpack.c.bf16 %v3430_v58, %v3427_v49 }
 0x7c7   :  { %6266 = vmatpush3.bf16.msra.mxu1 %v6265_v61  ;;  %v7349_v61 = vsub.f32 %v3398_v52, %v3427_v49  ;;  %v3951_v49 = vld [vmem:[#allocation2 + $0x1d8] sm:$0xff] }
 0x7c8   :  { %6267 = vmatprep.subr.bf16.mxu1 %v6625_v0  ;;  %v3974_v58 = vand.u32 4294901760, %v3951_v49 }
 0x7c9   :  { %v6355_v34 = vpack.c.bf16 %v7351_v62, %v7349_v61 }
 0x7cb   :  { %6269 = vmatpush3.bf16.msra.mxu1 %v6268_v9  ;;  %v3503_v9 = vand.u32 4294901760, %v3502_v2 }
 0x7cc   :  { %6270 = vmatprep.subr.bf16.mxu1 %v6625_v0 }
 0x7cf   :  { %6272 = vmatpush3.bf16.msra.mxu1 %v6271_v7  ;;  %v3517_v7 = vand.u32 4294901760, %v3516_v11 }
 0x7d0   :  { %6273 = vmatprep.subr.bf16.mxu1 %v6625_v0 }
 0x7d2   :  { %5583 = vmatmul.mubr.f32.vlgmr.msra.gmra.mrb[4].mxu1 %v2925_v21 }
 0x7d3   :  { %6275 = vmatpush3.bf16.msra.mxu1 %v6274_v8  ;;  %5601 = vmatprep.mubr.msk.f32.mxu1 %vm6626_vm0, %v6627_v1 }
 0x7d4   :  { %6276 = vmatprep.subr.bf16.mxu1 %v6625_v0 }
 0x7d7   :  { %6278 = vmatpush3.bf16.msra.mxu1 %v6277_v17  ;;  %v3529_v17 = vand.u32 4294901760, %v7342_v57 }
 0x7d8   :  { %6279 = vmatprep.subr.bf16.mxu1 %v6625_v0 }
 0x7db   :  { %6281 = vmatpush3.bf16.msra.mxu1 %v6280_v18 }
 0x7dc   :  { %6282 = vmatprep.subr.bf16.mxu1 %v6625_v0 }
 0x7df   :  { %6284 = vmatpush3.bf16.msra.mxu1 %v6283_v19 }
 0x7e0   :  { %6285 = vmatprep.subr.bf16.mxu1 %v6625_v0 }
 0x7e2   :  { %5602 = vmatmul.mubr.f32.vlgmr.msra.gmra.mrb[4].mxu1 %v2926_v33 }
 0x7e3   :  { %6287 = vmatpush3.bf16.msra.mxu1 %v7221_v26  ;;  %5620 = vmatprep.mubr.msk.f32.mxu1 %vm6626_vm0, %v6627_v1 }
 0x7e4   :  { %6288 = vmatprep.subr.bf16.mxu1 %v6625_v0 }
 0x7e7   :  { %6290 = vmatpush3.bf16.msra.mxu1 %v7225_v29 }
 0x7e8   :  { %6291 = vmatprep.subr.bf16.mxu1 %v6625_v0 }
 0x7eb   :  { %6293 = vmatpush3.bf16.msra.mxu1 %v7233_v36 }
 0x7ec   :  { %6294 = vmatprep.subr.bf16.mxu1 %v6625_v0 }
 0x7ef   :  { %6296 = vmatpush3.bf16.msra.mxu1 %v7247_v47 }
 0x7f0   :  { %6297 = vmatprep.subr.bf16.mxu1 %v6625_v0 }
 0x7f2   :  { %5621 = vmatmul.mubr.f32.vlgmr.msra.gmra.mrb[4].mxu1 %v2927_v28 }
 0x7f3   :  { %6299 = vmatpush3.bf16.msra.mxu1 %v6298_v22  ;;  %5639 = vmatprep.mubr.msk.f32.mxu1 %vm6626_vm0, %v6627_v1  ;;  %v3530_v22 = vsub.f32 %v7342_v57, %v3529_v17 }
 0x7f4   :  { %6300 = vmatprep.subr.bf16.mxu1 %v6625_v0 }
 0x7f7   :  { %6302 = vmatpush3.bf16.msra.mxu1 %v6301_v6 }
 0x7f8   :  { %6303 = vmatprep.subr.bf16.mxu1 %v6625_v0 }
 0x7fb   :  { %6305 = vmatpush3.bf16.msra.mxu1 %v6304_v23  ;;  %v3531_v23 = vand.u32 4294901760, %v3530_v22 }
 0x7fc   :  { %6306 = vmatprep.subr.bf16.mxu1 %v6625_v0 }
 0x7ff   :  { %6308 = vmatpush3.bf16.msra.mxu1 %v6307_v24  ;;  %v3536_v24 = vand.u32 4294901760, %v7349_v61 }
 0x800   :  { %6309 = vmatprep.subr.bf16.mxu1 %v6625_v0 }
 0x801   :  { %v3537_v27 = vsub.f32 %v7349_v61, %v3536_v24 }
 0x802   :  { %5640 = vmatmul.mubr.f32.vlgmr.msra.gmra.mrb[4].mxu1 %v2925_v21 }
 0x803   :  { %6311 = vmatpush3.bf16.msra.mxu1 %v7221_v26  ;;  %5658 = vmatprep.mubr.msk.f32.mxu1 %vm6626_vm0, %v6627_v1  ;;  %v3392_v26 = vld [vmem:[#allocation2 + $0x180] sm:$0xff]  ;;  %v3538_v16 = vand.u32 4294901760, %v3537_v27 }
 0x804   :  { %6312 = vmatprep.subr.bf16.mxu1 %v6625_v0  ;;  %v3409_v39 = vand.u32 4294901760, %v3392_v26 }
 0x805   :  { %v6343_v31 = vpack.c.bf16 %v3545_v30, %v3538_v16 }
 0x806   :  { %v7321_v41 = vpack.c.bf16 %v3412_v40, %v3409_v39  ;;  %v7329_v48 = vsub.f32 %v3392_v26, %v3409_v39  ;;  %v6379_v39 = vpack.c.bf16 %v3543_v25, %v3536_v24  ;;  %v4542_v40 = vld [vmem:[%s7540_s2 + $0x5] ss:$0 sm:$0xff] }
 0x807   :  { %6314 = vmatpush3.bf16.msra.mxu1 %v7225_v29  ;;  %v3394_v29 = vld [vmem:[#allocation2 + $0x190] sm:$0xff] }
 0x808   :  { %6315 = vmatprep.subr.bf16.mxu1 %v6625_v0  ;;  %6323 = vmatpush3.bf16.msra.mxu0 %v7321_v41  ;;  %v3494_v56 = vand.u32 4294901760, %v7329_v48 }
 0x809   :  { %6324 = vmatprep.subr.bf16.mxu0 %v6625_v0 }
 0x80a   :  { %v3495_v63 = vsub.f32 %v7329_v48, %v3494_v56  ;;  %v6370_v37 = vpack.c.bf16 %v3501_v59, %v3494_v56  ;;  %v3952_v56 = vld [vmem:[#allocation2 + $0x1e0] sm:$0xff]  ;;  %v3953_v59 = vld [vmem:[#allocation2 + $0x1e8] sm:$0xff] }
 0x80b   :  { %6317 = vmatpush3.bf16.msra.mxu1 %v7233_v36  ;;  %v3415_v36 = vand.u32 4294901760, %v3394_v29  ;;  %v3980_v61 = vand.u32 4294901760, %v3953_v59 }
 0x80c   :  { %6318 = vmatprep.subr.bf16.mxu1 %v6625_v0  ;;  %v3496_v3 = vand.u32 4294901760, %v3495_v63 }
 0x80d   :  { %v7325_v44 = vpack.c.bf16 %v3418_v43, %v3415_v36  ;;  %v7335_v54 = vsub.f32 %v3394_v29, %v3415_v36  ;;  %v7439_v11 = vsub.f32 %v3953_v59, %v3980_v61 }
 0x80e   :  { %v6334_v12 = vpack.c.bf16 %v3503_v9, %v3496_v3  ;;  %v3954_v3 = vld [vmem:[#allocation2 + $0x1f0] sm:$0xff]  ;;  %v7434_v9 = vsub.f32 %v3951_v49, %v3974_v58 }
 0x80f   :  { %6320 = vmatpush3.bf16.msra.mxu1 %v7247_v47  ;;  %6326 = vmatpush3.bf16.msra.mxu0 %v7325_v44  ;;  %v3421_v47 = vand.u32 4294901760, %v3396_v45  ;;  %v3508_v4 = vand.u32 4294901760, %v7335_v54  ;;  %v6349_v33 = vpack.c.bf16 %v7337_v55, %v7335_v54  ;;  %v3965_v55 = vand.u32 4294901760, %v3948_v53 }
 0x810   :  { %6393 = vmatprep.subr.bf16.mxu1 %v6625_v0  ;;  %6327 = vmatprep.subr.bf16.mxu0 %v6625_v0  ;;  %v4071_v25 = vand.u32 4294901760, %v7434_v9 }
 0x811   :  { %v7333_v51 = vpack.c.bf16 %v3424_v42, %v3421_v47  ;;  %v7340_v46 = vsub.f32 %v3396_v45, %v3421_v47  ;;  %v3509_v10 = vsub.f32 %v7335_v54, %v3508_v4  ;;  %v6373_v26 = vpack.c.bf16 %v3515_v5, %v3508_v4  ;;  %v3949_v54 = vld [vmem:[#allocation2 + $0x1c8] sm:$0xff]  ;;  %v3955_v4 = vld [vmem:[#allocation2 + $0x1f8] sm:$0xff] }
 0x812   :  { %5659 = vmatmul.mubr.f32.vlgmr.msra.gmra.mrb[4].mxu1 %v2925_v21  ;;  %v6346_v21 = vpack.c.bf16 %v7331_v50, %v7329_v48  ;;  %v7426_v62 = vsub.f32 %v3948_v53, %v3965_v55  ;;  %v4072_v20 = vsub.f32 %v7434_v9, %v4071_v25 }
 0x813   :  { %5791 = vmatprep.mubr.msk.f32.mxu1 %vm6626_vm0, %v6627_v1  ;;  %6329 = vmatpush3.bf16.msra.mxu0 %v7333_v51  ;;  %v3510_v15 = vand.u32 4294901760, %v3509_v10  ;;  %v3522_v8 = vand.u32 4294901760, %v7340_v46  ;;  %v6352_v28 = vpack.c.bf16 %v7342_v57, %v7340_v46  ;;  %v3950_v57 = vld [vmem:[#allocation2 + $0x1d0] sm:$0xff] }
 0x814   :  { %6330 = vmatprep.subr.bf16.mxu0 %v6625_v0 }
 0x815   :  { %v6337_v18 = vpack.c.bf16 %v3517_v7, %v3510_v15  ;;  %v3523_v19 = vsub.f32 %v7340_v46, %v3522_v8  ;;  %v6376_v38 = vpack.c.bf16 %v3529_v17, %v3522_v8  ;;  %v3986_v15 = vand.u32 4294901760, %v3955_v4 }
 0x816   :  { %v4050_v7 = vand.u32 4294901760, %v7426_v62 }
 0x817   :  { %6332 = vmatpush3.bf16.msra.mxu0 %v7347_v60  ;;  %v3524_v6 = vand.u32 4294901760, %v3523_v19  ;;  %v7448_v19 = vsub.f32 %v3955_v4, %v3986_v15 }
 0x818   :  { %6333 = vmatprep.subr.bf16.mxu0 %v6625_v0  ;;  %v4051_v22 = vsub.f32 %v7426_v62, %v4050_v7 }
 0x819   :  { %v6340_v14 = vpack.c.bf16 %v3531_v23, %v3524_v6 }
 0x81a   :  { %v4052_v23 = vand.u32 4294901760, %v4051_v22 }
 0x8e5   :  { %v3385_v29 = vpop.f32.mrb[4].mxu1 }
 0x8e6   :  { %v6470_v32 = vadd.f32 %v4542_v40, %v3385_v29  ;;  %v5660_v36 = vpop.f32.mrb[5].mxu1  ;;  %v4099_v40 = vand.u32 4294901760, %v7448_v19 }
 0x8e8   :  { %v3389_v43 = vmul.f32 0.01, %v6470_v32  ;;  %v4100_v36 = vsub.f32 %v7448_v19, %v4099_v40 }
 0x8ea   :  { %v3390_v45 = vmax.f32 %v6470_v32, %v3389_v43 }
 0x8ec   :  { %v3406_v35 = vsel %vm45_vm2, %v3390_v45, 0  ;;  %v4101_v45 = vand.u32 4294901760, %v4100_v36 }
 0x8ed   :  { %v3481_v47 = vand.u32 4294901760, %v3406_v35 }
 0x8ef   :  { %v3482_v42 = vsub.f32 %v3406_v35, %v3481_v47 }
 0x8f1   :  { %v3483_v48 = vand.u32 4294901760, %v3482_v42 }
 0x8f3   :  { %v3484_v50 = vsub.f32 %v3482_v42, %v3483_v48 }
 0x8f5   :  { %v3485_v52 = vand.u32 4294901760, %v3484_v50 }
 0x8f7   :  { %5678 = vmatmul.mubr.f32.vlgmr.msra.gmra.mrb[6].mxu0 %v3485_v52 }
 0x8f8   :  { %6335 = vmatpush3.bf16.msra.mxu0 %v6334_v12  ;;  %5696 = vmatprep.mubr.msk.f32.mxu0 %vm6626_vm0, %v6627_v1  ;;  %v3983_v12 = vand.u32 4294901760, %v3954_v3 }
 0x8f9   :  { %6336 = vmatprep.subr.bf16.mxu0 %v6625_v0 }
 0x8fa   :  { %v7444_v17 = vpack.c.bf16 %v3986_v15, %v3983_v12  ;;  %v6573_v15 = vld [vmem:[%s7538_s0] sm:$0x3] }
 0x8fc   :  { %6338 = vmatpush3.bf16.msra.mxu0 %v6337_v18  ;;  %v7446_v18 = vsub.f32 %v3954_v3, %v3983_v12 }
 0x8fd   :  { %6339 = vmatprep.subr.bf16.mxu0 %v6625_v0 }
 0x8fe   :  { %v6427_v50 = vpack.c.bf16 %v7448_v19, %v7446_v18 }
 0x900   :  { %6341 = vmatpush3.bf16.msra.mxu0 %v6340_v14 }
 0x901   :  { %6342 = vmatprep.subr.bf16.mxu0 %v6625_v0 }
 0x904   :  { %6344 = vmatpush3.bf16.msra.mxu0 %v6343_v31  ;;  %v4073_v31 = vand.u32 4294901760, %v4072_v20 }
 0x905   :  { %6345 = vmatprep.subr.bf16.mxu0 %v6625_v0 }
 0x907   :  { %5697 = vmatmul.mubr.f32.vlgmr.msra.gmra.mrb[6].mxu0 %v3481_v47 }
 0x908   :  { %6347 = vmatpush3.bf16.msra.mxu0 %v6346_v21  ;;  %5715 = vmatprep.mubr.msk.f32.mxu0 %vm6626_vm0, %v6627_v1 }
 0x909   :  { %6348 = vmatprep.subr.bf16.mxu0 %v6625_v0 }
 0x90c   :  { %6350 = vmatpush3.bf16.msra.mxu0 %v6349_v33  ;;  %v4085_v33 = vand.u32 4294901760, %v7439_v11 }
 0x90d   :  { %6351 = vmatprep.subr.bf16.mxu0 %v6625_v0 }
 0x910   :  { %6353 = vmatpush3.bf16.msra.mxu0 %v6352_v28 }
 0x911   :  { %6354 = vmatprep.subr.bf16.mxu0 %v6625_v0 }
 0x914   :  { %6356 = vmatpush3.bf16.msra.mxu0 %v6355_v34 }
 0x915   :  { %6357 = vmatprep.subr.bf16.mxu0 %v6625_v0 }
 0x917   :  { %5716 = vmatmul.mubr.f32.vlgmr.msra.gmra.mrb[6].mxu0 %v3482_v42 }
 0x918   :  { %6359 = vmatpush3.bf16.msra.mxu0 %v7321_v41  ;;  %5734 = vmatprep.mubr.msk.f32.mxu0 %vm6626_vm0, %v6627_v1 }
 0x919   :  { %6360 = vmatprep.subr.bf16.mxu0 %v6625_v0 }
 0x91c   :  { %6362 = vmatpush3.bf16.msra.mxu0 %v7325_v44 }
 0x91d   :  { %6363 = vmatprep.subr.bf16.mxu0 %v6625_v0 }
 0x920   :  { %6365 = vmatpush3.bf16.msra.mxu0 %v7333_v51 }
 0x921   :  { %6366 = vmatprep.subr.bf16.mxu0 %v6625_v0 }
 0x924   :  { %6368 = vmatpush3.bf16.msra.mxu0 %v7347_v60 }
 0x925   :  { %6369 = vmatprep.subr.bf16.mxu0 %v6625_v0 }
 0x927   :  { %5735 = vmatmul.mubr.f32.vlgmr.msra.gmra.mrb[6].mxu0 %v3483_v48 }
 0x928   :  { %6371 = vmatpush3.bf16.msra.mxu0 %v6370_v37  ;;  %5753 = vmatprep.mubr.msk.f32.mxu0 %vm6626_vm0, %v6627_v1  ;;  %v4086_v37 = vsub.f32 %v7439_v11, %v4085_v33 }
 0x929   :  { %6372 = vmatprep.subr.bf16.mxu0 %v6625_v0 }
 0x92c   :  { %6374 = vmatpush3.bf16.msra.mxu0 %v6373_v26 }
 0x92d   :  { %6375 = vmatprep.subr.bf16.mxu0 %v6625_v0 }
 0x930   :  { %6377 = vmatpush3.bf16.msra.mxu0 %v6376_v38  ;;  %v4087_v38 = vand.u32 4294901760, %v4086_v37 }
 0x931   :  { %6378 = vmatprep.subr.bf16.mxu0 %v6625_v0 }
 0x934   :  { %6380 = vmatpush3.bf16.msra.mxu0 %v6379_v39  ;;  %v4092_v39 = vand.u32 4294901760, %v7446_v18 }
 0x935   :  { %6381 = vmatprep.subr.bf16.mxu0 %v6625_v0 }
 0x936   :  { %v4093_v32 = vsub.f32 %v7446_v18, %v4092_v39 }
 0x937   :  { %5754 = vmatmul.mubr.f32.vlgmr.msra.gmra.mrb[6].mxu0 %v3481_v47 }
 0x938   :  { %6383 = vmatpush3.bf16.msra.mxu0 %v7321_v41  ;;  %5772 = vmatprep.mubr.msk.f32.mxu0 %vm6626_vm0, %v6627_v1  ;;  %v3968_v41 = vand.u32 4294901760, %v3949_v54  ;;  %v4094_v43 = vand.u32 4294901760, %v4093_v32 }
 0x939   :  { %6384 = vmatprep.subr.bf16.mxu0 %v6625_v0 }
 0x93a   :  { %v7418_v46 = vpack.c.bf16 %v3968_v41, %v3965_v55  ;;  %v7428_v63 = vsub.f32 %v3949_v54, %v3968_v41  ;;  %v6415_v35 = vpack.c.bf16 %v4101_v45, %v4094_v43  ;;  %v6451_v55 = vpack.c.bf16 %v4099_v40, %v4092_v39  ;;  %v4543_v41 = vld [vmem:[%s7540_s2 + $0x6] ss:$0 sm:$0xff] }
 0x93c   :  { %6386 = vmatpush3.bf16.msra.mxu0 %v7325_v44  ;;  %6395 = vmatpush3.bf16.msra.mxu1 %v7418_v46  ;;  %v3971_v44 = vand.u32 4294901760, %v3950_v57  ;;  %v4057_v8 = vand.u32 4294901760, %v7428_v63 }
 0x93d   :  { %6387 = vmatprep.subr.bf16.mxu0 %v6625_v0  ;;  %6396 = vmatprep.subr.bf16.mxu1 %v6625_v0 }
 0x93e   :  { %v7432_v5 = vsub.f32 %v3950_v57, %v3971_v44  ;;  %v4058_v6 = vsub.f32 %v7428_v63, %v4057_v8  ;;  %v6442_v52 = vpack.c.bf16 %v4057_v8, %v4050_v7 }
 0x940   :  { %6389 = vmatpush3.bf16.msra.mxu0 %v7333_v51  ;;  %v7422_v51 = vpack.c.bf16 %v3974_v58, %v3971_v44  ;;  %v4064_v24 = vand.u32 4294901760, %v7432_v5  ;;  %v4059_v14 = vand.u32 4294901760, %v4058_v6  ;;  %v6421_v42 = vpack.c.bf16 %v7434_v9, %v7432_v5 }
 0x941   :  { %6390 = vmatprep.subr.bf16.mxu0 %v6625_v0 }
 0x942   :  { %6398 = vmatpush3.bf16.msra.mxu1 %v7422_v51  ;;  %v4065_v27 = vsub.f32 %v7432_v5, %v4064_v24  ;;  %v6406_v16 = vpack.c.bf16 %v4059_v14, %v4052_v23  ;;  %v6445_v53 = vpack.c.bf16 %v4071_v25, %v4064_v24 }
 0x943   :  { %6399 = vmatprep.subr.bf16.mxu1 %v6625_v0 }
 0x944   :  { %6392 = vmatpush3.bf16.msra.mxu0 %v7347_v60  ;;  %v3977_v60 = vand.u32 4294901760, %v3952_v56  ;;  %v4066_v30 = vand.u32 4294901760, %v4065_v27 }
 0x946   :  { %v7430_v2 = vpack.c.bf16 %v3980_v61, %v3977_v60  ;;  %v7437_v10 = vsub.f32 %v3952_v56, %v3977_v60  ;;  %v6409_v28 = vpack.c.bf16 %v4073_v31, %v4066_v30 }
 0x947   :  { %5773 = vmatmul.mubr.f32.vlgmr.msra.gmra.mrb[6].mxu0 %v3481_v47  ;;  %v6418_v47 = vpack.c.bf16 %v7428_v63, %v7426_v62 }
 0x948   :  { %6401 = vmatpush3.bf16.msra.mxu1 %v7430_v2  ;;  %v4078_v21 = vand.u32 4294901760, %v7437_v10  ;;  %v6424_v48 = vpack.c.bf16 %v7439_v11, %v7437_v10 }
 0x949   :  { %6402 = vmatprep.subr.bf16.mxu1 %v6625_v0 }
 0x94a   :  { %v4079_v34 = vsub.f32 %v7437_v10, %v4078_v21  ;;  %v6448_v54 = vpack.c.bf16 %v4085_v33, %v4078_v21 }
 0x94c   :  { %6404 = vmatpush3.bf16.msra.mxu1 %v7444_v17  ;;  %v4080_v26 = vand.u32 4294901760, %v4079_v34 }
 0x94d   :  { %6405 = vmatprep.subr.bf16.mxu1 %v6625_v0 }
 0x94e   :  { %v6412_v29 = vpack.c.bf16 %v4087_v38, %v4080_v26 }
 0xa1a   :  { %v3941_v57 = vpop.f32.mrb[6].mxu0 }
 0xa1b   :  { %v6471_v49 = vadd.f32 %v4543_v41, %v3941_v57  ;;  %v5774_v44 = vpop.f32.mrb[7].mxu0 }
 0xa1d   :  { %v3945_v58 = vmul.f32 0.01, %v6471_v49 }
 0xa1f   :  { %v3946_v56 = vmax.f32 %v6471_v49, %v3945_v58 }
 0xa21   :  { %v3962_v59 = vsel %vm45_vm2, %v3946_v56, 0 }
 0xa22   :  { %v4037_v60 = vand.u32 4294901760, %v3962_v59 }
 0xa24   :  { %v4038_v61 = vsub.f32 %v3962_v59, %v4037_v60 }
 0xa26   :  { %v4039_v62 = vand.u32 4294901760, %v4038_v61 }
 0xa28   :  { %v4040_v63 = vsub.f32 %v4038_v61, %v4039_v62 }
 0xa2a   :  { %v4041_v3 = vand.u32 4294901760, %v4040_v63 }
 0xa2c   :  { %5792 = vmatmul.mubr.f32.vlgmr.msra.gmra.mrb[6].mxu1 %v4041_v3 }
 0xa2d   :  { %6407 = vmatpush3.bf16.msra.mxu1 %v6406_v16  ;;  %5810 = vmatprep.mubr.msk.f32.mxu1 %vm6626_vm0, %v6627_v1 }
 0xa2e   :  { %6408 = vmatprep.subr.bf16.mxu1 %v6625_v0 }
 0xa31   :  { %6410 = vmatpush3.bf16.msra.mxu1 %v6409_v28 }
 0xa32   :  { %6411 = vmatprep.subr.bf16.mxu1 %v6625_v0 }
 0xa35   :  { %6413 = vmatpush3.bf16.msra.mxu1 %v6412_v29 }
 0xa36   :  { %6414 = vmatprep.subr.bf16.mxu1 %v6625_v0 }
 0xa39   :  { %6416 = vmatpush3.bf16.msra.mxu1 %v6415_v35 }
 0xa3a   :  { %6417 = vmatprep.subr.bf16.mxu1 %v6625_v0 }
 0xa3c   :  { %5811 = vmatmul.mubr.f32.vlgmr.msra.gmra.mrb[6].mxu1 %v4037_v60 }
 0xa3d   :  { %6419 = vmatpush3.bf16.msra.mxu1 %v6418_v47  ;;  %5829 = vmatprep.mubr.msk.f32.mxu1 %vm6626_vm0, %v6627_v1 }
 0xa3e   :  { %6420 = vmatprep.subr.bf16.mxu1 %v6625_v0 }
 0xa41   :  { %6422 = vmatpush3.bf16.msra.mxu1 %v6421_v42 }
 0xa42   :  { %6423 = vmatprep.subr.bf16.mxu1 %v6625_v0 }
 0xa45   :  { %6425 = vmatpush3.bf16.msra.mxu1 %v6424_v48 }
 0xa46   :  { %6426 = vmatprep.subr.bf16.mxu1 %v6625_v0 }
 0xa49   :  { %6428 = vmatpush3.bf16.msra.mxu1 %v6427_v50 }
 0xa4a   :  { %6429 = vmatprep.subr.bf16.mxu1 %v6625_v0 }
 0xa4c   :  { %5830 = vmatmul.mubr.f32.vlgmr.msra.gmra.mrb[6].mxu1 %v4038_v61 }
 0xa4d   :  { %6431 = vmatpush3.bf16.msra.mxu1 %v7418_v46  ;;  %5848 = vmatprep.mubr.msk.f32.mxu1 %vm6626_vm0, %v6627_v1 }
 0xa4e   :  { %6432 = vmatprep.subr.bf16.mxu1 %v6625_v0 }
 0xa51   :  { %6434 = vmatpush3.bf16.msra.mxu1 %v7422_v51 }
 0xa52   :  { %6435 = vmatprep.subr.bf16.mxu1 %v6625_v0 }
 0xa55   :  { %6437 = vmatpush3.bf16.msra.mxu1 %v7430_v2 }
 0xa56   :  { %6438 = vmatprep.subr.bf16.mxu1 %v6625_v0 }
 0xa59   :  { %6440 = vmatpush3.bf16.msra.mxu1 %v7444_v17 }
 0xa5a   :  { %6441 = vmatprep.subr.bf16.mxu1 %v6625_v0 }
 0xa5c   :  { %5849 = vmatmul.mubr.f32.vlgmr.msra.gmra.mrb[6].mxu1 %v4039_v62 }
 0xa5d   :  { %6443 = vmatpush3.bf16.msra.mxu1 %v6442_v52  ;;  %5867 = vmatprep.mubr.msk.f32.mxu1 %vm6626_vm0, %v6627_v1 }
 0xa5e   :  { %6444 = vmatprep.subr.bf16.mxu1 %v6625_v0 }
 0xa61   :  { %6446 = vmatpush3.bf16.msra.mxu1 %v6445_v53 }
 0xa62   :  { %6447 = vmatprep.subr.bf16.mxu1 %v6625_v0 }
 0xa65   :  { %6449 = vmatpush3.bf16.msra.mxu1 %v6448_v54 }
 0xa66   :  { %6450 = vmatprep.subr.bf16.mxu1 %v6625_v0 }
 0xa69   :  { %6452 = vmatpush3.bf16.msra.mxu1 %v6451_v55 }
 0xa6a   :  { %6453 = vmatprep.subr.bf16.mxu1 %v6625_v0 }
 0xa6c   :  { %5868 = vmatmul.mubr.f32.vlgmr.msra.gmra.mrb[6].mxu1 %v4037_v60 }
 0xa6d   :  { %6455 = vmatpush3.bf16.msra.mxu1 %v7418_v46  ;;  %5886 = vmatprep.mubr.msk.f32.mxu1 %vm6626_vm0, %v6627_v1  ;;  %v4544_v46 = vld [vmem:[%s7540_s2 + $0x7] ss:$0 sm:$0xff]  ;;  %s6632_s2 = smov [#allocation5]  }
 0xa6e   :  { %6456 = vmatprep.subr.bf16.mxu1 %v6625_v0  ;;  %s4528_s24 = sshll.u32 %s6632_s2, 4  ;;  %s4529_s24 = int_to_ptr.vmem [resolvable:$true] %s4528_s24 }
 0xa6f   :  { %s6596_s25 = scalar_lea.vmem %s4529_s24, 32  ;;  %p6601_p9 = scmp.lt.s32.totalorder %s4529_s24, %s4529_s24 }
 0xa70   :  { %p6597_p8 = scmp.ne.s32.totalorder %s4529_s24, %s6596_s25  ;;  %p6602_p10 = scmp.lt.s32.totalorder %s6596_s25, %s6596_s25 }
 0xa71   :  { %6458 = vmatpush3.bf16.msra.mxu1 %v7422_v51 }
 0xa72   :  { %6459 = vmatprep.subr.bf16.mxu1 %v6625_v0  ;;  %p6603_p11 = por %p6602_p10, %p6601_p9 }
 0xa74   :  { %p6604_p12 = pnand %p6603_p11, %p6597_p8 }
 0xa75   :  { %6461 = vmatpush3.bf16.msra.mxu1 %v7430_v2 }
 0xa76   :  { %6462 = vmatprep.subr.bf16.mxu1 %v6625_v0 }
 0xa79   :  { %6464 = vmatpush3.bf16.msra.mxu1 %v7444_v17 }
 0xa7c   :  { %5887 = vmatmul.mubr.f32.vlgmr.msra.gmra.mrb[6].mxu1 %v4037_v60 }
 0xb4f   :  { %v4497_v4 = vpop.f32.mrb[6].mxu1 }
 0xb50   :  { %v6472_v5 = vadd.f32 %v4544_v46, %v4497_v4  ;;  %v5888_v1 = vpop.f32.mrb[7].mxu1 }
 0xb52   :  { %6568 = vtanh.f32 %v6472_v5  ;;  %4511 = vrot.lane.b32.xlu0 %v6472_v5, %s6631_s21 }
 0xb5c   :  { %v6569_v51 = vpop.eup %6568 }
 0xb5d   :  { %v4502_v9 = vsel %vm2255_vm3, %v6569_v51, 0.0 }
 0xb5e   :  { %4503 = vadd.xlane.f32.xlu1 %v4502_v9 }
 0xbc4   :  { %v4512_v8 = vpop.permute.xlu0 %4511 }
 0xbeb   :  { %v4504_v2 = vpop.xlane.xlu1 %4503 }
 0xbec   :  { %v4505_v10 = vsub.f32 0.0, %v4504_v2 }
 0xbee   :  { %v4506_v0 = vsel %vm2260_vm4, %v6569_v51, %v4505_v10 }
 0xbef   :  { %v4507_v11 = vmul.f32 1.442695, %v4506_v0 }
 0xbf1   :  { %6570 = vpow2.f32 %v4507_v11 }
 0xbfb   :  { %v6571_v12 = vpop.eup %6570 }
 0xbfc   :  { %v4509_v7 = vmul.f32 %v6573_v15, %v6571_v12 }
 0xbfe   :  { %v4514_v17 = vadd.f32 %v4512_v8, %v4509_v7 }
 0xc00   :  { %4516 = vrot.lane.b32.xlu0 %v4514_v17, %s6629_s9 }
 0xc72   :  { %v4517_v18 = vpop.permute.xlu0 %4516 }
 0xc73   :  { %v4519_v19 = vsel %vm30_vm1, %v7176_v13, %v4517_v18 }
 0xc74   :  { %4521 = vst.msk [vmem:[#allocation5] sm:$0x3] %vm4520_vm5, %v4519_v19 }
 0xc75   :  { %6607 = shalt.err (!%p6604_p12)
}
 0xc76   :  { %s6608_s26 = scalar_lea.hbm %s7541_s3, 32 }
 0xc77   :  { %p6609_p13 = scmp.ne.s32.totalorder %s7541_s3, %s6608_s26  ;;  %p6612_p0 = scmp.lt.u32.totalorder %s6608_s26, %s7541_s3 }
 0xc79   :  { %p6614_p1 = pnand %p6612_p0, %p6609_p13 }
 0xc7b   :  { %6617 = shalt.err (!%p6614_p1)
}
 0xc7c   :  { %4531 = dma.vmem_to_hbm [thread:$0]  %s4529_s24, 32, %s7541_s3, [#allocation4]  }
 0xc7d   :  { %6620 = dma.done.wait [#allocation4], 32  }
 0xc7e   :  { %6621 = vsyncadd [#allocation4], 4294967264 }
 0xc7f   :  { %4535 = vsyncpa [#allocation3], 1 }
 0xc80   :  { %4536 = vsyncpa [#allocation4], 1 }

</bundles_post_ra>
